<compile_context>
chip_gen: v7x
topology: tpu7x:2x2x1
jax: 0.10.0
libtpu: 0.0.40
codegen_flags: <defaults>
</compile_context>

<pallas_src>
import jax
import jax.numpy as jnp
from jax.experimental import pallas as pl
from jax.experimental.pallas import tpu as pltpu

LANE = 128  # TPU lane width; all feature dims are zero-padded to this.


def _leaky_relu(x, slope=0.01):
    return jnp.where(x >= 0, x, slope * x)


def mlp_kernel(x_ref,
               w1_ref, b1_ref,
               w2_ref, b2_ref,
               w3_ref, b3_ref,
               w4_ref, b4_ref,
               w5_ref, b5_ref,
               o_ref):
    # One batch tile [TB, 128] per grid step; weights are resident in VMEM.
    h = jnp.dot(x_ref[...], w1_ref[...], preferred_element_type=jnp.float32) + b1_ref[...]
    h = jnp.maximum(h, 0.0)                      # relu

    h = jnp.dot(h, w2_ref[...], preferred_element_type=jnp.float32) + b2_ref[...]
    h = jnp.maximum(h, 0.0)                      # relu

    h = jnp.dot(h, w3_ref[...], preferred_element_type=jnp.float32) + b3_ref[...]
    h = _leaky_relu(h)                           # leaky_relu (slope 0.01, PyTorch default)

    h = jnp.dot(h, w4_ref[...], preferred_element_type=jnp.float32) + b4_ref[...]
    h = _leaky_relu(h)                           # leaky_relu

    o = jnp.dot(h, w5_ref[...], preferred_element_type=jnp.float32) + b5_ref[...]
    o_ref[...] = o.astype(o_ref.dtype)


def _pad_to(arr, shape):
    pads = [(0, t - s) for s, t in zip(arr.shape, shape)]
    return jnp.pad(arr, pads)


def mlp_forward(x, params, *, tb=256):
    """x: [B, in_features] float32. params: list of (W[in,out], b[1,out]).

    Zero-padding lanes is exact: padded input lanes are 0, padded weight
    rows/cols and bias lanes are 0, and relu(0)=leaky_relu(0)=0, so padded
    lanes stay exactly 0 through every layer.
    """
    B, _ = x.shape
    out_features = params[-1][0].shape[1]

    # Pad batch to a multiple of the row tile and features to 128 lanes.
    tb = max(8, (tb // 8) * 8)
    b_pad = pl.cdiv(B, tb) * tb
    x_p = _pad_to(x.astype(jnp.float32), (b_pad, LANE))

    flat_params = []
    for w, b in params:
        flat_params.append(_pad_to(w.astype(jnp.float32), (LANE, LANE)))
        flat_params.append(_pad_to(b.astype(jnp.float32), (1, LANE)))

    grid = (b_pad // tb,)

    x_spec = pl.BlockSpec((tb, LANE), lambda i: (i, 0))        # streamed per step
    w_spec = pl.BlockSpec((LANE, LANE), lambda i: (0, 0))      # resident (constant block)
    b_spec = pl.BlockSpec((1, LANE), lambda i: (0, 0))         # resident (constant block)
    param_specs = [w_spec, b_spec] * len(params)

    out_spec = pl.BlockSpec((tb, LANE), lambda i: (i, 0))      # lane-dense output slab
    out_shape = jax.ShapeDtypeStruct((b_pad, LANE), jnp.float32)

    out_padded = pl.pallas_call(
        mlp_kernel,
        grid=grid,
        in_specs=[x_spec] + param_specs,
        out_specs=out_spec,
        out_shape=out_shape,
        compiler_params=pltpu.CompilerParams(
            dimension_semantics=("parallel",),   # shard batch steps across TCs on v7x
        ),
    )(x_p, *flat_params)

    # Slice padding off outside the kernel.
    return out_padded[:B, :out_features]


def init_params(key, in_features=5, out_features=10):
    """Kaiming-uniform weights (fan_in, a=0 -> gain sqrt(2), matching
    nn.init.kaiming_uniform_(m.weight) defaults), zero biases."""
    dims = [in_features, 24, 20, 20, 14, out_features]
    params = []
    for i in range(len(dims) - 1):
        fan_in, fan_out = dims[i], dims[i + 1]
        key, sub = jax.random.split(key)
        gain = jnp.sqrt(2.0)
        bound = gain * jnp.sqrt(3.0 / fan_in)
        # PyTorch weight is [out, in]; we store the transpose [in, out].
        w = jax.random.uniform(sub, (fan_in, fan_out), jnp.float32,
                               minval=-bound, maxval=bound)
        b = jnp.zeros((1, fan_out), jnp.float32)
        params.append((w, b))
    return params


def reference_forward(x, params):
    """Pure-JAX reference to check kernel correctness."""
    (w1, b1), (w2, b2), (w3, b3), (w4, b4), (w5, b5) = params
    h = jnp.maximum(x @ w1 + b1, 0.0)
    h = jnp.maximum(h @ w2 + b2, 0.0)
    h = _leaky_relu(h @ w3 + b3)
    h = _leaky_relu(h @ w4 + b4)
    return h @ w5 + b5


if __name__ == "__main__":
    key = jax.random.PRNGKey(0)
    k_in, k_params = jax.random.split(key)

    # Small but grid-exercising shapes: 512 rows with a 128-row tile -> 4 grid steps.
    B, IN_F, OUT_F = 512, 5, 10
    x = jax.random.normal(k_in, (B, IN_F), jnp.float32)
    params = init_params(k_params, IN_F, OUT_F)

    out = mlp_forward(x, params, tb=128)
    out = jax.block_until_ready(out)

    ref = reference_forward(x, params)
    assert out.shape == (B, OUT_F), out.shape
    assert jnp.allclose(out, ref, atol=1e-4, rtol=1e-4), "mismatch vs reference"

    print("KERNEL_OK")
</pallas_src>

<mosaic_0001>
module attributes {stable_mosaic.version = 11 : i64} {
  func.func @mlp_kernel(%arg0: i32, %arg1: memref<128x128xf32, #tpu.memory_space<vmem>>, %arg2: memref<128x128xf32, #tpu.memory_space<vmem>>, %arg3: memref<1x128xf32, #tpu.memory_space<vmem>>, %arg4: memref<128x128xf32, #tpu.memory_space<vmem>>, %arg5: memref<1x128xf32, #tpu.memory_space<vmem>>, %arg6: memref<128x128xf32, #tpu.memory_space<vmem>>, %arg7: memref<1x128xf32, #tpu.memory_space<vmem>>, %arg8: memref<128x128xf32, #tpu.memory_space<vmem>>, %arg9: memref<1x128xf32, #tpu.memory_space<vmem>>, %arg10: memref<128x128xf32, #tpu.memory_space<vmem>>, %arg11: memref<1x128xf32, #tpu.memory_space<vmem>>, %arg12: memref<128x128xf32, #tpu.memory_space<vmem>>) attributes {dimension_semantics = [#tpu.dimension_semantics<parallel>], iteration_bounds = array<i64: 4>, scalar_prefetch = 0 : i64, scratch_operands = 0 : i64, tpu.core_type = #tpu.core_type<tc>, window_params = [{transform_indices = @transform_0, window_bounds = array<i64: 128, 128>}, {pipeline_mode = #tpu.pipeline_mode<synchronous>, transform_indices = @transform_1, window_bounds = array<i64: 128, 128>}, {pipeline_mode = #tpu.pipeline_mode<synchronous>, transform_indices = @transform_2, window_bounds = array<i64: 1, 128>}, {pipeline_mode = #tpu.pipeline_mode<synchronous>, transform_indices = @transform_3, window_bounds = array<i64: 128, 128>}, {pipeline_mode = #tpu.pipeline_mode<synchronous>, transform_indices = @transform_4, window_bounds = array<i64: 1, 128>}, {pipeline_mode = #tpu.pipeline_mode<synchronous>, transform_indices = @transform_5, window_bounds = array<i64: 128, 128>}, {pipeline_mode = #tpu.pipeline_mode<synchronous>, transform_indices = @transform_6, window_bounds = array<i64: 1, 128>}, {pipeline_mode = #tpu.pipeline_mode<synchronous>, transform_indices = @transform_7, window_bounds = array<i64: 128, 128>}, {pipeline_mode = #tpu.pipeline_mode<synchronous>, transform_indices = @transform_8, window_bounds = array<i64: 1, 128>}, {pipeline_mode = #tpu.pipeline_mode<synchronous>, transform_indices = @transform_9, window_bounds = array<i64: 128, 128>}, {pipeline_mode = #tpu.pipeline_mode<synchronous>, transform_indices = @transform_10, window_bounds = array<i64: 1, 128>}, {transform_indices = @transform_11, window_bounds = array<i64: 128, 128>}]} {
    %c0 = arith.constant 0 : index
    %c0_0 = arith.constant 0 : index
    %0 = vector.load %arg1[%c0, %c0_0] : memref<128x128xf32, #tpu.memory_space<vmem>>, vector<128x128xf32>
    %c0_1 = arith.constant 0 : index
    %c0_2 = arith.constant 0 : index
    %1 = vector.load %arg2[%c0_1, %c0_2] : memref<128x128xf32, #tpu.memory_space<vmem>>, vector<128x128xf32>
    %cst = arith.constant dense<0.000000e+00> : vector<128x128xf32>
    %2 = tpu.matmul %0, %1, %cst {dimension_numbers = #tpu.dot_dimension_numbers<[1], [0], [0], [1], [0, 0, 1, 1], [], []>} : vector<128x128xf32>, vector<128x128xf32>, vector<128x128xf32> -> vector<128x128xf32>
    %c0_3 = arith.constant 0 : index
    %c0_4 = arith.constant 0 : index
    %3 = vector.load %arg3[%c0_3, %c0_4] : memref<1x128xf32, #tpu.memory_space<vmem>>, vector<1x128xf32>
    %4 = vector.broadcast %3 : vector<1x128xf32> to vector<128x128xf32>
    %5 = arith.addf %2, %4 : vector<128x128xf32>
    %cst_5 = arith.constant 0.000000e+00 : f32
    %6 = vector.broadcast %cst_5 : f32 to vector<128x128xf32>
    %7 = arith.maximumf %5, %6 : vector<128x128xf32>
    %c0_6 = arith.constant 0 : index
    %c0_7 = arith.constant 0 : index
    %8 = vector.load %arg4[%c0_6, %c0_7] : memref<128x128xf32, #tpu.memory_space<vmem>>, vector<128x128xf32>
    %cst_8 = arith.constant dense<0.000000e+00> : vector<128x128xf32>
    %9 = tpu.matmul %7, %8, %cst_8 {dimension_numbers = #tpu.dot_dimension_numbers<[1], [0], [0], [1], [0, 0, 1, 1], [], []>} : vector<128x128xf32>, vector<128x128xf32>, vector<128x128xf32> -> vector<128x128xf32>
    %c0_9 = arith.constant 0 : index
    %c0_10 = arith.constant 0 : index
    %10 = vector.load %arg5[%c0_9, %c0_10] : memref<1x128xf32, #tpu.memory_space<vmem>>, vector<1x128xf32>
    %11 = vector.broadcast %10 : vector<1x128xf32> to vector<128x128xf32>
    %12 = arith.addf %9, %11 : vector<128x128xf32>
    %cst_11 = arith.constant 0.000000e+00 : f32
    %13 = vector.broadcast %cst_11 : f32 to vector<128x128xf32>
    %14 = arith.maximumf %12, %13 : vector<128x128xf32>
    %c0_12 = arith.constant 0 : index
    %c0_13 = arith.constant 0 : index
    %15 = vector.load %arg6[%c0_12, %c0_13] : memref<128x128xf32, #tpu.memory_space<vmem>>, vector<128x128xf32>
    %cst_14 = arith.constant dense<0.000000e+00> : vector<128x128xf32>
    %16 = tpu.matmul %14, %15, %cst_14 {dimension_numbers = #tpu.dot_dimension_numbers<[1], [0], [0], [1], [0, 0, 1, 1], [], []>} : vector<128x128xf32>, vector<128x128xf32>, vector<128x128xf32> -> vector<128x128xf32>
    %c0_15 = arith.constant 0 : index
    %c0_16 = arith.constant 0 : index
    %17 = vector.load %arg7[%c0_15, %c0_16] : memref<1x128xf32, #tpu.memory_space<vmem>>, vector<1x128xf32>
    %18 = vector.broadcast %17 : vector<1x128xf32> to vector<128x128xf32>
    %19 = arith.addf %16, %18 : vector<128x128xf32>
    %cst_17 = arith.constant 0.000000e+00 : f32
    %20 = vector.broadcast %cst_17 : f32 to vector<128x128xf32>
    %21 = arith.cmpf oge, %19, %20 : vector<128x128xf32>
    %cst_18 = arith.constant 0.00999999977 : f32
    %22 = vector.broadcast %cst_18 : f32 to vector<128x128xf32>
    %23 = arith.mulf %22, %19 : vector<128x128xf32>
    %24 = arith.select %21, %19, %23 : vector<128x128xi1>, vector<128x128xf32>
    %c0_19 = arith.constant 0 : index
    %c0_20 = arith.constant 0 : index
    %25 = vector.load %arg8[%c0_19, %c0_20] : memref<128x128xf32, #tpu.memory_space<vmem>>, vector<128x128xf32>
    %cst_21 = arith.constant dense<0.000000e+00> : vector<128x128xf32>
    %26 = tpu.matmul %24, %25, %cst_21 {dimension_numbers = #tpu.dot_dimension_numbers<[1], [0], [0], [1], [0, 0, 1, 1], [], []>} : vector<128x128xf32>, vector<128x128xf32>, vector<128x128xf32> -> vector<128x128xf32>
    %c0_22 = arith.constant 0 : index
    %c0_23 = arith.constant 0 : index
    %27 = vector.load %arg9[%c0_22, %c0_23] : memref<1x128xf32, #tpu.memory_space<vmem>>, vector<1x128xf32>
    %28 = vector.broadcast %27 : vector<1x128xf32> to vector<128x128xf32>
    %29 = arith.addf %26, %28 : vector<128x128xf32>
    %cst_24 = arith.constant 0.000000e+00 : f32
    %30 = vector.broadcast %cst_24 : f32 to vector<128x128xf32>
    %31 = arith.cmpf oge, %29, %30 : vector<128x128xf32>
    %cst_25 = arith.constant 0.00999999977 : f32
    %32 = vector.broadcast %cst_25 : f32 to vector<128x128xf32>
    %33 = arith.mulf %32, %29 : vector<128x128xf32>
    %34 = arith.select %31, %29, %33 : vector<128x128xi1>, vector<128x128xf32>
    %c0_26 = arith.constant 0 : index
    %c0_27 = arith.constant 0 : index
    %35 = vector.load %arg10[%c0_26, %c0_27] : memref<128x128xf32, #tpu.memory_space<vmem>>, vector<128x128xf32>
    %cst_28 = arith.constant dense<0.000000e+00> : vector<128x128xf32>
    %36 = tpu.matmul %34, %35, %cst_28 {dimension_numbers = #tpu.dot_dimension_numbers<[1], [0], [0], [1], [0, 0, 1, 1], [], []>} : vector<128x128xf32>, vector<128x128xf32>, vector<128x128xf32> -> vector<128x128xf32>
    %c0_29 = arith.constant 0 : index
    %c0_30 = arith.constant 0 : index
    %37 = vector.load %arg11[%c0_29, %c0_30] : memref<1x128xf32, #tpu.memory_space<vmem>>, vector<1x128xf32>
    %38 = vector.broadcast %37 : vector<1x128xf32> to vector<128x128xf32>
    %39 = arith.addf %36, %38 : vector<128x128xf32>
    %c0_31 = arith.constant 0 : index
    %c0_32 = arith.constant 0 : index
    %40 = vector.load %arg12[%c0_31, %c0_32] : memref<128x128xf32, #tpu.memory_space<vmem>>, vector<128x128xf32>
    tpu.vector_store %arg12[%c0_31, %c0_32], %39 {strides = array<i32>} : memref<128x128xf32, #tpu.memory_space<vmem>>, vector<128x128xf32>,
    return
  }
  func.func @transform_0(%arg0: i32) -> (i32, i32) {
    %c0_i32 = arith.constant 0 : i32
    %c0_i32_0 = arith.constant 0 : i32
    return %arg0, %c0_i32 : i32, i32
  }
  func.func @transform_1(%arg0: i32) -> (i32, i32) {
    %c0_i32 = arith.constant 0 : i32
    %c0_i32_0 = arith.constant 0 : i32
    %c0_i32_1 = arith.constant 0 : i32
    return %c0_i32, %c0_i32_0 : i32, i32
  }
  func.func @transform_2(%arg0: i32) -> (i32, i32) {
    %c0_i32 = arith.constant 0 : i32
    %c0_i32_0 = arith.constant 0 : i32
    %c0_i32_1 = arith.constant 0 : i32
    return %c0_i32, %c0_i32_0 : i32, i32
  }
  func.func @transform_3(%arg0: i32) -> (i32, i32) {
    %c0_i32 = arith.constant 0 : i32
    %c0_i32_0 = arith.constant 0 : i32
    %c0_i32_1 = arith.constant 0 : i32
    return %c0_i32, %c0_i32_0 : i32, i32
  }
  func.func @transform_4(%arg0: i32) -> (i32, i32) {
    %c0_i32 = arith.constant 0 : i32
    %c0_i32_0 = arith.constant 0 : i32
    %c0_i32_1 = arith.constant 0 : i32
    return %c0_i32, %c0_i32_0 : i32, i32
  }
  func.func @transform_5(%arg0: i32) -> (i32, i32) {
    %c0_i32 = arith.constant 0 : i32
    %c0_i32_0 = arith.constant 0 : i32
    %c0_i32_1 = arith.constant 0 : i32
    return %c0_i32, %c0_i32_0 : i32, i32
  }
  func.func @transform_6(%arg0: i32) -> (i32, i32) {
    %c0_i32 = arith.constant 0 : i32
    %c0_i32_0 = arith.constant 0 : i32
    %c0_i32_1 = arith.constant 0 : i32
    return %c0_i32, %c0_i32_0 : i32, i32
  }
  func.func @transform_7(%arg0: i32) -> (i32, i32) {
    %c0_i32 = arith.constant 0 : i32
    %c0_i32_0 = arith.constant 0 : i32
    %c0_i32_1 = arith.constant 0 : i32
    return %c0_i32, %c0_i32_0 : i32, i32
  }
  func.func @transform_8(%arg0: i32) -> (i32, i32) {
    %c0_i32 = arith.constant 0 : i32
    %c0_i32_0 = arith.constant 0 : i32
    %c0_i32_1 = arith.constant 0 : i32
    return %c0_i32, %c0_i32_0 : i32, i32
  }
  func.func @transform_9(%arg0: i32) -> (i32, i32) {
    %c0_i32 = arith.constant 0 : i32
    %c0_i32_0 = arith.constant 0 : i32
    %c0_i32_1 = arith.constant 0 : i32
    return %c0_i32, %c0_i32_0 : i32, i32
  }
  func.func @transform_10(%arg0: i32) -> (i32, i32) {
    %c0_i32 = arith.constant 0 : i32
    %c0_i32_0 = arith.constant 0 : i32
    %c0_i32_1 = arith.constant 0 : i32
    return %c0_i32, %c0_i32_0 : i32, i32
  }
  func.func @transform_11(%arg0: i32) -> (i32, i32) {
    %c0_i32 = arith.constant 0 : i32
    %c0_i32_0 = arith.constant 0 : i32
    return %arg0, %c0_i32 : i32, i32
  }
}

</mosaic_0001>

<bundles_post_ra>
// kernel: tpu_custom_call.1
= control target key start
LH: loop header
LB: loop body
LE: loop exit
PB: predicated region body
PF: predicated region fallthrough
CT: control target
= control target key end

     0   :  { %s3123_s0 = inlined_call_operand.hbm [shape: f32[512,128], index: 0, kind: input, shape index: {}]   ;;  %s3124_s1 = inlined_call_operand.hbm [shape: f32[128,128], index: 1, kind: input, shape index: {}]   ;;  %s3125_s2 = inlined_call_operand.vmem [shape: f32[1,128], index: 2, kind: input, shape index: {}]   ;;  %s3126_s3 = inlined_call_operand.hbm [shape: f32[128,128], index: 3, kind: input, shape index: {}]   ;;  %s3127_s4 = inlined_call_operand.vmem [shape: f32[1,128], index: 4, kind: input, shape index: {}]   ;;  %s3128_s5 = inlined_call_operand.hbm [shape: f32[128,128], index: 5, kind: input, shape index: {}]   ;;  %s3129_s6 = inlined_call_operand.vmem [shape: f32[1,128], index: 6, kind: input, shape index: {}]   ;;  %s3130_s7 = inlined_call_operand.hbm [shape: f32[128,128], index: 7, kind: input, shape index: {}]   ;;  %s3131_s8 = inlined_call_operand.vmem [shape: f32[1,128], index: 8, kind: input, shape index: {}]   ;;  %s3132_s9 = inlined_call_operand.hbm [shape: f32[128,128], index: 9, kind: input, shape index: {}]   ;;  %s3133_s10 = inlined_call_operand.vmem [shape: f32[1,128], index: 10, kind: input, shape index: {}]   ;;  %s3134_s11 = inlined_call_operand.hbm [shape: f32[512,128], index: 11, kind: output, shape index: {}]  }
   0x1   :  { %3140 = sst [smem:[#allocation19_spill]] %s3124_s1 }
   0x2   :  { %3141 = sst [smem:[#allocation20_spill]] %s3131_s8 }
   0x3   :  { %3142 = sst [smem:[#allocation21_spill]] %s3133_s10 }
   0x4   :  { %3143 = sst [smem:[#allocation22_spill]] %s3134_s11 }
   0x5   :  { %16 = vsyncpa [#allocation3], 0 }
   0x6   :  { %18 = vsyncpa [#allocation3 + $0x1], 0 }
   0x7   :  { %19 = vsyncpa [#allocation6], 0 }
   0x8   :  { %20 = vsyncpa [#allocation9], 0 }
   0x9   :  { %21 = vsyncpa [#allocation12], 0 }
   0xa   :  { %22 = vsyncpa [#allocation4], 0 }
   0xb   :  { %24 = vsyncpa [#allocation4 + $0x1], 0  ;;  %s2684_s17 = smov 0   ;;  %s2686_s18 = smov 0  }
   0xc   :  { %s2688_s19 = smov 0   ;;  %s2690_s20 = smov 0  }
   0xd LB: > { %s2613_s21 = smov [#allocation5]   ;;  %s2705_s23 = sadd.s32 4294967295, %s2611_s20   ;;  %s2611_s20 = sphi %s2690_s20, %s3169_s20   ;;  %s2607_s19 = sphi %s2688_s19, %s3168_s19   ;;  %s2603_s18 = sphi %s2686_s18, %s3167_s18   ;;  %s2599_s17 = sphi %s2684_s17, %s3166_s17  }
   0xe   : > { %s309_s22 = sshll.u32 %s2613_s21, 4  ;;  %p1616_p0 = scmp.ge.s32.totalorder %s2611_s20, 1  ;;  %s2710_s22 = int_to_ptr.vmem [resolvable:$true] %s309_s22 }
   0xf   : > { %p3136_p1 = scmp.eq.s32.totalorder %s2705_s23, 0  ;;  %p297_p2 = scmp.lt.s32.totalorder %s2611_s20, 5 }
  0x10   : > { %s2614_s25 = smov [#allocation8]   ;;  %s2615_s28 = smov [#allocation7]  }
  0x11   : > { %p2712_p3 = pnand %p1616_p0, %p297_p2  ;;  %s341_s26 = sshll.u32 %s2614_s25, 4  ;;  %s2724_s26 = int_to_ptr.vmem [resolvable:$true] %s341_s26 }
  0x12   : > { %s325_s29 = sshll.u32 %s2615_s28, 4  ;;  %s3146_s1 = sld [smem:[#allocation19_spill]]  ;;  %s2726_s29 = int_to_ptr.vmem [resolvable:$true] %s325_s29 }
  0x13   : > { %s3144_s24 = scalar_select %p2712_p3, 1, 0 }
  0x14   : > { %p2286_p4 = pneg %p2712_p3 }
  0x16   : > { %p2720_p5 = pnand %p2286_p4, %p3136_p1 }
  0x18   : > { %s2363_s13 = scalar_lea.hbm %s3146_s1, 2048  ;;  %p2736_p7 = pneg %p2720_p5 }
  0x19   : > { %p2364_p6 = scmp.ne.s32.totalorder %s3146_s1, %s2363_s13  ;;  %p2370_p10 = scmp.lt.u32.totalorder %s2363_s13, %s3146_s1 }
  0x1b   : > { %p2366_p8 = pnand %p2736_p7, %p2364_p6 }
  0x1d   : > { %p2367_p9 = pneg %p2366_p8 }
  0x1f   : > { %p2372_p11 = pnand %p2370_p10, %p2367_p9 }
  0x21   : > { %2375 = shalt.err (!%p2372_p11)
}
  0x22   : > { %s2376_s28 = scalar_lea.vmem %s2710_s22, 2048  ;;  %p2384_p2 = scmp.lt.s32.totalorder %s2710_s22, %s2710_s22 }
  0x23   : > { %p2377_p12 = scmp.ne.s32.totalorder %s2710_s22, %s2376_s28  ;;  %p2385_p4 = scmp.lt.s32.totalorder %s2376_s28, %s2376_s28 }
  0x25   : > { %p2379_p13 = pnand %p2377_p12, %p2736_p7  ;;  %p2386_p6 = por %p2385_p4, %p2384_p2 }
  0x27   : > { %p2380_p0 = pneg %p2379_p13 }
  0x29   : > { %p2387_p8 = pnand %p2386_p6, %p2380_p0 }
  0x2b   : > { %2390 = shalt.err (!%p2387_p8)
}
  0x2c   : > { %s3138_s30 = smov 128   ;;  %s2617_s12 = smov 8  }
  0x2d   : > { %2289 = dma.hbm_to_vmem [thread:$0]  (!%p2720_p5), %s3146_s1, 2048, %s2710_s22, [#allocation6], %s3138_s30, %s3138_s30, %s2617_s12  }
  0x2e   : > { %s2391_s25 = scalar_lea.hbm %s3128_s5, 2048 }
  0x2f   : > { %p2392_p9 = scmp.ne.s32.totalorder %s3128_s5, %s2391_s25  ;;  %p2398_p12 = scmp.lt.u32.totalorder %s2391_s25, %s3128_s5 }
  0x31   : > { %p2394_p10 = pnand %p2392_p9, %p2736_p7 }
  0x33   : > { %p2395_p11 = pneg %p2394_p10 }
  0x35   : > { %p2400_p13 = pnand %p2398_p12, %p2395_p11 }
  0x37   : > { %2403 = shalt.err (!%p2400_p13)
}
  0x38   : > { %s2404_s22 = scalar_lea.vmem %s2724_s26, 2048  ;;  %p2412_p6 = scmp.lt.s32.totalorder %s2724_s26, %s2724_s26 }
  0x39   : > { %p2405_p0 = scmp.ne.s32.totalorder %s2724_s26, %s2404_s22  ;;  %p2413_p8 = scmp.lt.s32.totalorder %s2404_s22, %s2404_s22 }
  0x3b   : > { %p2407_p2 = pnand %p2405_p0, %p2736_p7  ;;  %p2414_p9 = por %p2413_p8, %p2412_p6 }
  0x3d   : > { %p2408_p4 = pneg %p2407_p2 }
  0x3f   : > { %p2415_p10 = pnand %p2414_p9, %p2408_p4 }
  0x41   : > { %2418 = shalt.err (!%p2415_p10)
}
  0x42   : > { %2295 = dma.hbm_to_vmem [thread:$0]  (!%p2720_p5), %s3128_s5, 2048, %s2724_s26, [#allocation9], %s3138_s30, %s3138_s30, %s2617_s12  }
  0x43   : > { %s2419_s14 = scalar_lea.hbm %s3126_s3, 2048 }
  0x44   : > { %p2420_p11 = scmp.ne.s32.totalorder %s3126_s3, %s2419_s14  ;;  %p2426_p0 = scmp.lt.u32.totalorder %s2419_s14, %s3126_s3 }
  0x46   : > { %p2422_p12 = pnand %p2420_p11, %p2736_p7 }
  0x48   : > { %p2423_p13 = pneg %p2422_p12 }
  0x4a   : > { %p2428_p2 = pnand %p2426_p0, %p2423_p13 }
  0x4c   : > { %2431 = shalt.err (!%p2428_p2)
}
  0x4d   : > { %s2432_s26 = scalar_lea.vmem %s2726_s29, 2048  ;;  %p2440_p9 = scmp.lt.s32.totalorder %s2726_s29, %s2726_s29 }
  0x4e   : > { %p2433_p4 = scmp.ne.s32.totalorder %s2726_s29, %s2432_s26  ;;  %p2441_p10 = scmp.lt.s32.totalorder %s2432_s26, %s2432_s26 }
  0x50   : > { %p2435_p6 = pnand %p2433_p4, %p2736_p7  ;;  %p2442_p11 = por %p2441_p10, %p2440_p9 }
  0x52   : > { %p2436_p8 = pneg %p2435_p6 }
  0x54   : > { %p2443_p12 = pnand %p2442_p11, %p2436_p8 }
  0x56   : > { %2446 = shalt.err (!%p2443_p12)
}
  0x57   : > { %2292 = dma.hbm_to_vmem [thread:$0]  (!%p2720_p5), %s3126_s3, 2048, %s2726_s29, [#allocation6], %s3138_s30, %s3138_s30, %s2617_s12  }
  0x58   : > { %s2618_s10 = smov [#allocation10]   ;;  %s2619_s13 = smov [#allocation11]  }
  0x59   : > { %s357_s11 = sshll.u32 %s2618_s10, 4  ;;  %s373_s14 = sshll.u32 %s2619_s13, 4  ;;  %s358_s11 = int_to_ptr.vmem [resolvable:$true] %s357_s11  ;;  %s374_s14 = int_to_ptr.vmem [resolvable:$true] %s373_s14 }
  0x5a   : > { %s2447_s25 = scalar_lea.hbm %s3130_s7, 2048 }
  0x5b   : > { %p2448_p13 = scmp.ne.s32.totalorder %s3130_s7, %s2447_s25  ;;  %p2454_p4 = scmp.lt.u32.totalorder %s2447_s25, %s3130_s7 }
  0x5d   : > { %p2450_p0 = pnand %p2448_p13, %p2736_p7 }
  0x5f   : > { %p2451_p2 = pneg %p2450_p0 }
  0x61   : > { %p2456_p6 = pnand %p2454_p4, %p2451_p2 }
  0x63   : > { %2459 = shalt.err (!%p2456_p6)
}
  0x64   : > { %s2460_s29 = scalar_lea.vmem %s358_s11, 2048  ;;  %p2468_p11 = scmp.lt.s32.totalorder %s358_s11, %s358_s11 }
  0x65   : > { %p2461_p8 = scmp.ne.s32.totalorder %s358_s11, %s2460_s29  ;;  %p2469_p12 = scmp.lt.s32.totalorder %s2460_s29, %s2460_s29 }
  0x67   : > { %p2463_p9 = pnand %p2461_p8, %p2736_p7  ;;  %p2470_p1 = por %p2469_p12, %p2468_p11 }
  0x69   : > { %p2464_p10 = pneg %p2463_p9 }
  0x6b   : > { %p2471_p3 = pnand %p2470_p1, %p2464_p10 }
  0x6d   : > { %2474 = shalt.err (!%p2471_p3)
}
  0x6e   : > { %2298 = dma.hbm_to_vmem [thread:$0]  (!%p2720_p5), %s3130_s7, 2048, %s358_s11, [#allocation9], %s3138_s30, %s3138_s30, %s2617_s12  }
  0x6f   : > { %s2475_s15 = scalar_lea.hbm %s3132_s9, 2048 }
  0x70   : > { %p2476_p1 = scmp.ne.s32.totalorder %s3132_s9, %s2475_s15  ;;  %p2482_p0 = scmp.lt.u32.totalorder %s2475_s15, %s3132_s9 }
  0x72   : > { %p2478_p3 = pnand %p2476_p1, %p2736_p7 }
  0x74   : > { %p2479_p13 = pneg %p2478_p3 }
  0x76   : > { %p2484_p2 = pnand %p2482_p0, %p2479_p13 }
  0x78   : > { %2487 = shalt.err (!%p2484_p2)
}
  0x79   : > { %s2488_s22 = scalar_lea.vmem %s374_s14, 2048  ;;  %p2496_p9 = scmp.lt.s32.totalorder %s374_s14, %s374_s14 }
  0x7a   : > { %p2489_p4 = scmp.ne.s32.totalorder %s374_s14, %s2488_s22  ;;  %p2497_p10 = scmp.lt.s32.totalorder %s2488_s22, %s2488_s22 }
  0x7c   : > { %p2491_p6 = pnand %p2489_p4, %p2736_p7  ;;  %p2498_p11 = por %p2497_p10, %p2496_p9 }
  0x7e   : > { %p2492_p8 = pneg %p2491_p6 }
  0x80   : > { %p2499_p12 = pnand %p2498_p11, %p2492_p8 }
  0x82   : > { %2502 = shalt.err (!%p2499_p12)
}
  0x83   : > { %2301 = dma.hbm_to_vmem [thread:$0]  (!%p2720_p5), %s3132_s9, 2048, %s374_s14, [#allocation12], %s3138_s30, %s3138_s30, %s2617_s12  }
  0x84   : > { %s1615_s27 = sadd.s32 4294967294, %s2611_s20   ;;  %s2856_s16 = sadd.s32 1, %s2611_s20  }
  0x85   : > { %s37_s1 = sadd.s32 1, %s2607_s19  ;;  %s34_s8 = ssub.s32 %s2611_s20, %s2856_s16 }
  0x86   : > { %p44_p7 = scmp.ne.s32.totalorder %s2607_s19, %s2603_s18  ;;  %p35_p1 = scmp.eq.s32.totalorder %s34_s8, 0 }
  0x87   : > { %p45_p3 = scmp.eq.s32.totalorder %s2611_s20, 0  ;;  %p50_p13 = scmp.ne.s32.totalorder %s2603_s18, %s2599_s17 }
  0x88   : > { %p284_p0 = scmp.eq.s32.totalorder %s2705_s23, 3  ;;  %p3148_p4 = scmp.eq.s32.totalorder %s2705_s23, 0 }
  0x89   : > { %s2868_s10 = scalar_select %p35_p1, %s2607_s19, %s37_s1  }
  0x8a   : > { %p46_p2 = por %p45_p3, %p44_p7  ;;  %p2872_p6 = por %p3148_p4, %p50_p13 }
  0x8b   : > { %p2876_p5 = por %p284_p0, %p44_p7  ;;  %p290_p8 = scmp.eq.s32.totalorder %s1615_s27, 3 }
  0x8c   : > { %p2315_p9 = scmp.lt.s32.totalorder %s2611_s20, 4  ;;  %s390_s15 = sand.u32 1, %s2607_s19  }
  0x8d   : > { %s3150_s14 = scalar_select %p2876_p5, 1, 0 }
  0x8e   : > { %p2882_p10 = por %p290_p8, %p50_p13  ;;  %s1623_s25 = sshll.u32 %s390_s15, 7 }
  0x8f   : > { %s1644_s28 = sshll.u32 %s2611_s20, 11  ;;  %s394_s29 = scalar_lea.vmem [#allocation2], %s1623_s25 }
  0x90   : > { %s3151_s21 = scalar_select %p2882_p10, 1, 0 }
  0x91   : > { %s2890_s11 = scalar_lea.hbm %s3123_s0, %s1644_s28  ;;  %s401_s1 = sshll.u32 %s394_s29, 4  ;;  %s2896_s1 = int_to_ptr.vmem [resolvable:$true] %s401_s1 }
  0x92   : > { %p2892_p11 = pnand %p2315_p9, %p46_p2  ;;  %s2898_s8 = scalar_lea.sflag [#allocation3], %s390_s15 }
  0x93   : > { %s2503_s30 = scalar_lea.hbm %s2890_s11, 2048  ;;  %s2508_s26 = scalar_lea.hbm %s3123_s0, 8192 }
  0x94   : > { %p2504_p12 = scmp.ne.s32.totalorder %s2890_s11, %s2503_s30  ;;  %p2505_p7 = pneg %p2892_p11 }
  0x95   : > { %p2509_p13 = scmp.lt.u32.totalorder %s2890_s11, %s3123_s0  ;;  %p2510_p0 = scmp.lt.u32.totalorder %s2508_s26, %s2503_s30 }
  0x96   : > { %p2506_p1 = pnand %p2505_p7, %p2504_p12  ;;  %p2512_p4 = scmp.lt.u32.totalorder %s2503_s30, %s2890_s11 }
  0x97   : > { %p2511_p2 = por %p2510_p0, %p2509_p13 }
  0x98   : > { %p2507_p3 = pneg %p2506_p1 }
  0x99   : > { %p2513_p8 = por %p2512_p4, %p2511_p2 }
  0x9b   : > { %p2514_p9 = pnand %p2513_p8, %p2507_p3 }
  0x9d   : > { %2517 = shalt.err (!%p2514_p9)
}
  0x9e   : > { %s2518_s15 = scalar_lea.vmem %s2896_s1, 2048  ;;  %s2620_s25 = smov [#allocation2]  }
  0x9f   : > { %p2519_p12 = scmp.ne.s32.totalorder %s2896_s1, %s2518_s15  ;;  %s2523_s28 = sshll.u32 %s2620_s25, 4  ;;  %s2524_s28 = int_to_ptr.vmem [resolvable:$false] %s2523_s28 }
  0xa0   : > { %s2525_s22 = scalar_lea.vmem %s2524_s28, 4096  ;;  %p2526_p5 = scmp.lt.s32.totalorder %s2896_s1, %s2524_s28 }
  0xa1   : > { %p2521_p1 = pnand %p2519_p12, %p2505_p7  ;;  %p2527_p13 = scmp.lt.s32.totalorder %s2525_s22, %s2518_s15 }
  0xa3   : > { %p2522_p10 = pneg %p2521_p1  ;;  %p2528_p0 = por %p2527_p13, %p2526_p5 }
  0xa5   : > { %p2529_p2 = pnand %p2528_p0, %p2522_p10 }
  0xa7   : > { %2532 = shalt.err (!%p2529_p2)
}
  0xa8   : > { %s3153_s30 = smov 128   ;;  %p3154_p7 = scmp.ne.s32.totalorder %s3144_s24, 0 }
  0xa9   : > { %2305 = dma.hbm_to_vmem [thread:$0]  (!%p2892_p11), %s2890_s11, 2048, %s2896_s1, %s2898_s8, %s3153_s30, %s3153_s30, %s2617_s12  }
  0xaa   : > { %413 = sbr.rel (%p3154_p7) target bundleno = 1355 (0x54b), region = 64  ;;  %s2932_s26 = sand.u32 (!%p3154_p7), 1, %s2603_s18  }
  0xab   : > { %s1627_s29 = sshll.u32 (!%p3154_p7), %s2932_s26, 7  ;;  %s416_s15 = scalar_lea.sflag (!%p3154_p7), [#allocation3], %s2932_s26 }
  0xac   : > { %s2938_s27 = scalar_lea.vmem (!%p3154_p7), [#allocation2], %s1627_s29 }
  0xb1   : > { %2578 = dma.done.wait (%p2872_p6), %s416_s15, 2048  }
  0xb2   : > { %2580 = vsyncadd (%p2872_p6), %s416_s15, 4294965248  ;;  %p3155_p5 = scmp.eq.s32.totalorder %s2705_s23, 0 }
  0xb4   : > { %2582 = dma.done.wait (%p3155_p5), [#allocation6], 4096   ;;  %p3156_p10 = pmov %p3155_p5 }
  0xb5   : > { %p3157_p11 = pmov %p3155_p5 }
  0xb6   : > { %2584 = vsyncadd (%p3156_p10), [#allocation6], 4294963200 }
  0xb7   : > { %2586 = dma.done.wait (%p3157_p11), [#allocation9], 4096   ;;  %p3158_p3 = pmov %p3155_p5 }
  0xb9   : > { %2588 = vsyncadd (%p3158_p3), [#allocation9], 4294963200  ;;  %p3159_p4 = pmov %p3158_p3 }
  0xba   : > { %p3160_p8 = pmov %p3158_p3 }
  0xbb   : > { %2590 = dma.done.wait (%p3159_p4), [#allocation12], 2048  }
  0xbc   : > { %2592 = vsyncadd (%p3160_p8), [#allocation12], 4294965248  ;;  %v496_v0 = vld [vmem:[#allocation5] sm:$0xff]  ;;  %v497_v1 = vld [vmem:[#allocation5 + $0x8] sm:$0xff]  ;;  %s3161_s22 = sld [smem:[#allocation20_spill]]  ;;  %s3055_s24 = scalar_lea.vmem [#allocation13], %s1627_s29 }
  0xbd   : > { %v498_v2 = vld [vmem:[#allocation5 + $0x10] sm:$0xff]  ;;  %v2086_v3 = vpack.c.bf16 %v497_v1, %v496_v0  ;;  %v499_v4 = vld [vmem:[#allocation5 + $0x18] sm:$0xff]  ;;  %v500_v6 = vld [vmem:[#allocation5 + $0x20] sm:$0xff]  ;;  %s1645_s29 = sshll.u32 %s2705_s23, 11  ;;  %s1494_s12 = sshll.u32 %s3055_s24, 4  ;;  %s3078_s12 = int_to_ptr.vmem [resolvable:$true] %s1494_s12 }
  0xbe   : > { %v2090_v5 = vpack.c.bf16 %v499_v4, %v498_v2  ;;  %v501_v7 = vld [vmem:[#allocation5 + $0x28] sm:$0xff]  ;;  %v480_v9 = vld [vmem:[%s2938_s27] sm:$0xff]  ;;  %v502_v10 = vld [vmem:[#allocation5 + $0x30] sm:$0xff]  ;;  %s3163_s1 = sld [smem:[#allocation22_spill]]  ;;  %s1481_s23 = scalar_lea.sflag [#allocation4], %s2932_s26 }
  0xbf   : > { %2087 = vmatprep.subr.bf16.mxu0 %v2086_v3  ;;  %v2094_v8 = vpack.c.bf16 %v501_v7, %v500_v6  ;;  %v503_v11 = vld [vmem:[#allocation5 + $0x38] sm:$0xff]  ;;  %1838 = vmatprep.mubr.f32.mxu0 %v480_v9  ;;  %v504_v13 = vld [vmem:[#allocation5 + $0x40] sm:$0xff]  ;;  %v505_v14 = vld [vmem:[#allocation5 + $0x48] sm:$0xff]  ;;  %s2533_s25 = scalar_lea.vmem %s3078_s12, 2048  ;;  %p3164_p9 = scmp.ne.s32.totalorder %s3150_s14, 0 }
  0xc0   : > { %2089 = vmatpush3.bf16.msra.mxu0 %v2086_v3  ;;  %v2098_v12 = vpack.c.bf16 %v503_v11, %v502_v10  ;;  %v680_v15 = vld [vmem:[#allocation7] sm:$0xff]  ;;  %v681_v16 = vld [vmem:[#allocation7 + $0x8] sm:$0xff]  ;;  %v682_v17 = vld [vmem:[#allocation7 + $0x10] sm:$0xff]  ;;  %v2102_v21 = vpack.c.bf16 %v505_v14, %v504_v13  ;;  %p2534_p6 = scmp.ne.s32.totalorder %s3078_s12, %s2533_s25  ;;  %s2621_s28 = smov [#allocation13]  }
  0xc1   : > { %2091 = vmatprep.subr.bf16.mxu0 %v2090_v5  ;;  %v683_v18 = vld [vmem:[#allocation7 + $0x18] sm:$0xff]  ;;  %v2118_v19 = vpack.c.bf16 %v681_v16, %v680_v15  ;;  %v684_v22 = vld [vmem:[#allocation7 + $0x20] sm:$0xff]  ;;  %v685_v23 = vld [vmem:[#allocation7 + $0x28] sm:$0xff] }
  0xc2   : > { %v2122_v20 = vpack.c.bf16 %v683_v18, %v682_v17  ;;  %v506_v24 = vld [vmem:[#allocation5 + $0x50] sm:$0xff]  ;;  %v507_v25 = vld [vmem:[#allocation5 + $0x58] sm:$0xff]  ;;  %v2126_v26 = vpack.c.bf16 %v685_v23, %v684_v22  ;;  %v508_v30 = vld [vmem:[#allocation5 + $0x60] sm:$0xff]  ;;  %p2535_p12 = pnand %p2534_p6, %p3164_p9 }
  0xc3   : > { %2119 = vmatprep.subr.bf16.mxu1 %v2118_v19  ;;  %v2106_v27 = vpack.c.bf16 %v507_v25, %v506_v24  ;;  %v686_v28 = vld [vmem:[#allocation7 + $0x30] sm:$0xff]  ;;  %v687_v29 = vld [vmem:[#allocation7 + $0x38] sm:$0xff]  ;;  %v509_v31 = vld [vmem:[#allocation5 + $0x68] sm:$0xff] }
  0xc4   : > { %2093 = vmatpush3.bf16.msra.mxu0 %v2090_v5  ;;  %2121 = vmatpush3.bf16.msra.mxu1 %v2118_v19  ;;  %v2130_v32 = vpack.c.bf16 %v687_v29, %v686_v28  ;;  %v2110_v33 = vpack.c.bf16 %v509_v31, %v508_v30  ;;  %v688_v34 = vld [vmem:[#allocation7 + $0x40] sm:$0xff]  ;;  %v689_v35 = vld [vmem:[#allocation7 + $0x48] sm:$0xff]  ;;  %v510_v36 = vld [vmem:[#allocation5 + $0x70] sm:$0xff]  ;;  %s3076_s8 = scalar_lea.hbm %s3163_s1, %s1645_s29  ;;  %p2536_p1 = pneg %p2535_p12 }
  0xc5   : > { %2095 = vmatprep.subr.bf16.mxu0 %v2094_v8  ;;  %2123 = vmatprep.subr.bf16.mxu1 %v2122_v20  ;;  %v511_v37 = vld [vmem:[#allocation5 + $0x78] sm:$0xff]  ;;  %v2134_v38 = vpack.c.bf16 %v689_v35, %v688_v34  ;;  %v690_v40 = vld [vmem:[#allocation7 + $0x50] sm:$0xff]  ;;  %v692_v43 = vld [vmem:[#allocation7 + $0x60] sm:$0xff] }
  0xc6   : > { %v2114_v39 = vpack.c.bf16 %v511_v37, %v510_v36  ;;  %v691_v41 = vld [vmem:[#allocation7 + $0x58] sm:$0xff]  ;;  %v693_v44 = vld [vmem:[#allocation7 + $0x68] sm:$0xff]  ;;  %v482_v47 = vld [vmem:[%s2938_s27 + $0x10] sm:$0xff] }
  0xc7   : > { %v2138_v42 = vpack.c.bf16 %v691_v41, %v690_v40  ;;  %v481_v45 = vld [vmem:[%s2938_s27 + $0x8] sm:$0xff]  ;;  %v2142_v46 = vpack.c.bf16 %v693_v44, %v692_v43  ;;  %v483_v48 = vld [vmem:[%s2938_s27 + $0x18] sm:$0xff]  ;;  %v484_v49 = vld [vmem:[%s2938_s27 + $0x20] sm:$0xff] }
  0xc8   : > { %2097 = vmatpush3.bf16.msra.mxu0 %v2094_v8  ;;  %2125 = vmatpush3.bf16.msra.mxu1 %v2122_v20  ;;  %v485_v50 = vld [vmem:[%s2938_s27 + $0x28] sm:$0xff]  ;;  %v486_v51 = vld [vmem:[%s2938_s27 + $0x30] sm:$0xff]  ;;  %v487_v52 = vld [vmem:[%s2938_s27 + $0x38] sm:$0xff] }
  0xc9   : > { %2099 = vmatprep.subr.bf16.mxu0 %v2098_v12  ;;  %2127 = vmatprep.subr.bf16.mxu1 %v2126_v26  ;;  %v488_v53 = vld [vmem:[%s2938_s27 + $0x40] sm:$0xff]  ;;  %v489_v54 = vld [vmem:[%s2938_s27 + $0x48] sm:$0xff]  ;;  %v490_v55 = vld [vmem:[%s2938_s27 + $0x50] sm:$0xff] }
  0xca   : > { %v491_v56 = vld [vmem:[%s2938_s27 + $0x58] sm:$0xff]  ;;  %v492_v57 = vld [vmem:[%s2938_s27 + $0x60] sm:$0xff]  ;;  %v493_v58 = vld [vmem:[%s2938_s27 + $0x68] sm:$0xff] }
  0xcb   : > { %v494_v59 = vld [vmem:[%s2938_s27 + $0x70] sm:$0xff]  ;;  %v495_v60 = vld [vmem:[%s2938_s27 + $0x78] sm:$0xff]  ;;  %v864_v0 = vld [vmem:[#allocation8] sm:$0xff]  ;;  %s3162_s27 = sld [smem:[#allocation21_spill]] }
  0xcc   : > { %2101 = vmatpush3.bf16.msra.mxu0 %v2098_v12  ;;  %2129 = vmatpush3.bf16.msra.mxu1 %v2126_v26  ;;  %v694_v61 = vld [vmem:[#allocation7 + $0x70] sm:$0xff]  ;;  %v695_v62 = vld [vmem:[#allocation7 + $0x78] sm:$0xff]  ;;  %v865_v1 = vld [vmem:[#allocation8 + $0x8] sm:$0xff] }
  0xcd   : > { %2103 = vmatprep.subr.bf16.mxu0 %v2102_v21  ;;  %2131 = vmatprep.subr.bf16.mxu1 %v2130_v32  ;;  %v2146_v63 = vpack.c.bf16 %v695_v62, %v694_v61  ;;  %v866_v2 = vld [vmem:[#allocation8 + $0x10] sm:$0xff]  ;;  %v2150_v3 = vpack.c.bf16 %v865_v1, %v864_v0  ;;  %v867_v4 = vld [vmem:[#allocation8 + $0x18] sm:$0xff]  ;;  %v868_v6 = vld [vmem:[#allocation8 + $0x20] sm:$0xff] }
  0xce   : > { %v2154_v5 = vpack.c.bf16 %v867_v4, %v866_v2  ;;  %v869_v7 = vld [vmem:[#allocation8 + $0x28] sm:$0xff]  ;;  %v870_v9 = vld [vmem:[#allocation8 + $0x30] sm:$0xff]  ;;  %v871_v10 = vld [vmem:[#allocation8 + $0x38] sm:$0xff] }
  0xcf   : > { %v2158_v8 = vpack.c.bf16 %v869_v7, %v868_v6  ;;  %v2162_v11 = vpack.c.bf16 %v871_v10, %v870_v9  ;;  %v872_v12 = vld [vmem:[#allocation8 + $0x40] sm:$0xff]  ;;  %v873_v13 = vld [vmem:[#allocation8 + $0x48] sm:$0xff]  ;;  %v874_v15 = vld [vmem:[#allocation8 + $0x50] sm:$0xff] }
  0xd0   : > { %2105 = vmatpush3.bf16.msra.mxu0 %v2102_v21  ;;  %2133 = vmatpush3.bf16.msra.mxu1 %v2130_v32  ;;  %v2166_v14 = vpack.c.bf16 %v873_v13, %v872_v12  ;;  %v875_v16 = vld [vmem:[#allocation8 + $0x58] sm:$0xff]  ;;  %v876_v18 = vld [vmem:[#allocation8 + $0x60] sm:$0xff]  ;;  %v877_v19 = vld [vmem:[#allocation8 + $0x68] sm:$0xff] }
  0xd1   : > { %2107 = vmatprep.subr.bf16.mxu0 %v2106_v27  ;;  %2135 = vmatprep.subr.bf16.mxu1 %v2134_v38  ;;  %v2170_v17 = vpack.c.bf16 %v875_v16, %v874_v15  ;;  %v2174_v20 = vpack.c.bf16 %v877_v19, %v876_v18  ;;  %v1634_v21 = vld [vmem:[%s3125_s2] ss:$0 sm:$0xff]  ;;  %v878_v6 = vld [vmem:[#allocation8 + $0x70] sm:$0xff]  ;;  %v879_v7 = vld [vmem:[#allocation8 + $0x78] sm:$0xff] }
  0xd2   : > { %v1080_v9 = vld [vmem:[#allocation10] sm:$0xff]  ;;  %v1081_v10 = vld [vmem:[#allocation10 + $0x8] sm:$0xff]  ;;  %v1083_v13 = vld [vmem:[#allocation10 + $0x18] sm:$0xff] }
  0xd3   : > { %v2182_v12 = vpack.c.bf16 %v1081_v10, %v1080_v9  ;;  %v1084_v15 = vld [vmem:[#allocation10 + $0x20] sm:$0xff]  ;;  %v1085_v16 = vld [vmem:[#allocation10 + $0x28] sm:$0xff]  ;;  %v1086_v18 = vld [vmem:[#allocation10 + $0x30] sm:$0xff] }
  0xd4   : > { %2109 = vmatpush3.bf16.msra.mxu0 %v2106_v27  ;;  %2137 = vmatpush3.bf16.msra.mxu1 %v2134_v38  ;;  %v1087_v19 = vld [vmem:[#allocation10 + $0x38] sm:$0xff] }
  0xd5   : > { %2111 = vmatprep.subr.bf16.mxu0 %v2110_v33  ;;  %2139 = vmatprep.subr.bf16.mxu1 %v2138_v42 }
  0xd8   : > { %2113 = vmatpush3.bf16.msra.mxu0 %v2110_v33  ;;  %2141 = vmatpush3.bf16.msra.mxu1 %v2138_v42 }
  0xd9   : > { %2115 = vmatprep.subr.bf16.mxu0 %v2114_v39  ;;  %2143 = vmatprep.subr.bf16.mxu1 %v2142_v46 }
  0xdc   : > { %2117 = vmatpush3.bf16.msra.mxu0 %v2114_v39  ;;  %2145 = vmatpush3.bf16.msra.mxu1 %v2142_v46 }
  0xdd   : > { %2147 = vmatprep.subr.bf16.mxu1 %v2146_v63  ;;  %2151 = vmatprep.subr.bf16.mxu0 %v2150_v3 }
  0xdf   : > { %1839 = vmatmul.mubr.f32.vlgmr.msra.gmra.mrb[0].mxu0 %v481_v45 }
  0xe0   : > { %1841 = vmatprep.mubr.f32.mxu0 %v482_v47  ;;  %2149 = vmatpush3.bf16.msra.mxu1 %v2146_v63 }
  0xe1   : > { %2153 = vmatpush3.bf16.msra.mxu0 %v2150_v3  ;;  %2183 = vmatprep.subr.bf16.mxu1 %v2182_v12 }
  0xe2   : > { %2155 = vmatprep.subr.bf16.mxu0 %v2154_v5 }
  0xe3   : > { %1842 = vmatmul.mubr.f32.gmra.mrb[2].mxu0 %v483_v48 }
  0xe4   : > { %1844 = vmatprep.mubr.f32.mxu0 %v484_v49 }
  0xe5   : > { %2157 = vmatpush3.bf16.msra.mxu0 %v2154_v5 }
  0xe6   : > { %2159 = vmatprep.subr.bf16.mxu0 %v2158_v8 }
  0xe7   : > { %1845 = vmatmul.mubr.f32.gmra.mrb[4].mxu0 %v485_v50 }
  0xe8   : > { %1847 = vmatprep.mubr.f32.mxu0 %v486_v51 }
  0xe9   : > { %2161 = vmatpush3.bf16.msra.mxu0 %v2158_v8  ;;  %v2178_v8 = vpack.c.bf16 %v879_v7, %v878_v6 }
  0xea   : > { %2163 = vmatprep.subr.bf16.mxu0 %v2162_v11 }
  0xeb   : > { %1848 = vmatmul.mubr.f32.gmra.mrb[6].mxu0 %v487_v52 }
  0xec   : > { %1850 = vmatprep.mubr.f32.mxu0 %v488_v53 }
  0xed   : > { %2165 = vmatpush3.bf16.msra.mxu0 %v2162_v11  ;;  %v1082_v11 = vld [vmem:[#allocation10 + $0x10] sm:$0xff] }
  0xee   : > { %2167 = vmatprep.subr.bf16.mxu0 %v2166_v14 }
  0xef   : > { %1851 = vmatmul.mubr.f32.gmra.mrb[8].mxu0 %v489_v54 }
  0xf0   : > { %1853 = vmatprep.mubr.f32.mxu0 %v490_v55 }
  0xf1   : > { %2169 = vmatpush3.bf16.msra.mxu0 %v2166_v14  ;;  %v2186_v14 = vpack.c.bf16 %v1083_v13, %v1082_v11 }
  0xf2   : > { %2171 = vmatprep.subr.bf16.mxu0 %v2170_v17 }
  0xf3   : > { %1854 = vmatmul.mubr.f32.gmra.mrb[10].mxu0 %v491_v56 }
  0xf4   : > { %1856 = vmatprep.mubr.f32.mxu0 %v492_v57 }
  0xf5   : > { %2173 = vmatpush3.bf16.msra.mxu0 %v2170_v17  ;;  %v2190_v17 = vpack.c.bf16 %v1085_v16, %v1084_v15  ;;  %v1094_v15 = vld [vmem:[#allocation10 + $0x70] sm:$0xff]  ;;  %v1095_v16 = vld [vmem:[#allocation10 + $0x78] sm:$0xff] }
  0xf6   : > { %2175 = vmatprep.subr.bf16.mxu0 %v2174_v20 }
  0xf7   : > { %1857 = vmatmul.mubr.f32.gmra.mrb[12].mxu0 %v493_v58 }
  0xf8   : > { %1859 = vmatprep.mubr.f32.mxu0 %v494_v59 }
  0xf9   : > { %2177 = vmatpush3.bf16.msra.mxu0 %v2174_v20  ;;  %v2194_v20 = vpack.c.bf16 %v1087_v19, %v1086_v18  ;;  %v1296_v18 = vld [vmem:[#allocation11] sm:$0xff]  ;;  %v1297_v19 = vld [vmem:[#allocation11 + $0x8] sm:$0xff] }
  0xfa   : > { %2179 = vmatprep.subr.bf16.mxu0 %v2178_v8 }
  0xfb   : > { %1860 = vmatmul.mubr.f32.gmra.mrb[14].mxu0 %v495_v60 }
  0xfd   : > { %2181 = vmatpush3.bf16.msra.mxu0 %v2178_v8 }
 0x1b2   : > { %v1840_v22 = vpop.f32.mrb[0].mxu0 }
 0x1b3   : > { %v591_v23 = vadd.f32 %v1840_v22, %v1634_v21  ;;  %v585_v24 = vpop.f32.mrb[1].mxu0  ;;  %v1089_v22 = vld [vmem:[#allocation10 + $0x48] sm:$0xff] }
 0x1b4   : > { %v586_v25 = vadd.f32 %v1634_v21, %v585_v24  ;;  %v1090_v24 = vld [vmem:[#allocation10 + $0x50] sm:$0xff] }
 0x1b5   : > { %v665_v28 = vmax.f32 %v591_v23, 0.0 }
 0x1b6   : > { %v1843_v26 = vpop.f32.mrb[2].mxu0  ;;  %v664_v27 = vmax.f32 %v586_v25, 0.0  ;;  %v1091_v25 = vld [vmem:[#allocation10 + $0x58] sm:$0xff] }
 0x1b7   : > { %v601_v29 = vadd.f32 %v1843_v26, %v1634_v21  ;;  %v595_v30 = vpop.f32.mrb[3].mxu0  ;;  %v2202_v26 = vpack.c.bf16 %v1091_v25, %v1090_v24  ;;  %v1300_v24 = vld [vmem:[#allocation11 + $0x20] sm:$0xff]  ;;  %v1301_v25 = vld [vmem:[#allocation11 + $0x28] sm:$0xff] }
 0x1b8   : > { %v596_v31 = vadd.f32 %v1634_v21, %v595_v30  ;;  %1894 = vmatprep.mubr.f32.mxu1 %v664_v27  ;;  %v1092_v27 = vld [vmem:[#allocation10 + $0x60] sm:$0xff] }
 0x1b9   : > { %1895 = vmatmul.mubr.f32.vlgmr.msra.gmra.mrb[0].mxu1 %v665_v28  ;;  %v667_v34 = vmax.f32 %v601_v29, 0.0  ;;  %v1093_v28 = vld [vmem:[#allocation10 + $0x68] sm:$0xff]  ;;  %v1635_v30 = vld [vmem:[%s3127_s4] ss:$0 sm:$0xff] }
 0x1ba   : > { %v666_v32 = vmax.f32 %v596_v31, 0.0  ;;  %v1846_v33 = vpop.f32.mrb[4].mxu0  ;;  %2185 = vmatpush3.bf16.msra.mxu1 %v2182_v12  ;;  %v2206_v29 = vpack.c.bf16 %v1093_v28, %v1092_v27  ;;  %v1302_v27 = vld [vmem:[#allocation11 + $0x30] sm:$0xff]  ;;  %v1303_v28 = vld [vmem:[#allocation11 + $0x38] sm:$0xff] }
 0x1bb   : > { %v611_v35 = vadd.f32 %v1846_v33, %v1634_v21  ;;  %v605_v36 = vpop.f32.mrb[5].mxu0  ;;  %2187 = vmatprep.subr.bf16.mxu1 %v2186_v14 }
 0x1bc   : > { %v606_v37 = vadd.f32 %v1634_v21, %v605_v36  ;;  %1897 = vmatprep.mubr.f32.mxu1 %v666_v32 }
 0x1bd   : > { %1898 = vmatmul.mubr.f32.gmra.mrb[2].mxu1 %v667_v34  ;;  %v669_v40 = vmax.f32 %v611_v35, 0.0 }
 0x1be   : > { %v668_v38 = vmax.f32 %v606_v37, 0.0  ;;  %v1849_v39 = vpop.f32.mrb[6].mxu0  ;;  %2189 = vmatpush3.bf16.msra.mxu1 %v2186_v14 }
 0x1bf   : > { %v621_v41 = vadd.f32 %v1849_v39, %v1634_v21  ;;  %v615_v42 = vpop.f32.mrb[7].mxu0  ;;  %2191 = vmatprep.subr.bf16.mxu1 %v2190_v17 }
 0x1c0   : > { %v616_v43 = vadd.f32 %v1634_v21, %v615_v42  ;;  %1900 = vmatprep.mubr.f32.mxu1 %v668_v38 }
 0x1c1   : > { %1901 = vmatmul.mubr.f32.gmra.mrb[4].mxu1 %v669_v40  ;;  %v671_v46 = vmax.f32 %v621_v41, 0.0 }
 0x1c2   : > { %v670_v44 = vmax.f32 %v616_v43, 0.0  ;;  %v1852_v45 = vpop.f32.mrb[8].mxu0  ;;  %2193 = vmatpush3.bf16.msra.mxu1 %v2190_v17  ;;  %v2210_v17 = vpack.c.bf16 %v1095_v16, %v1094_v15 }
 0x1c3   : > { %v631_v47 = vadd.f32 %v1852_v45, %v1634_v21  ;;  %v625_v48 = vpop.f32.mrb[9].mxu0  ;;  %2195 = vmatprep.subr.bf16.mxu1 %v2194_v20 }
 0x1c4   : > { %v626_v49 = vadd.f32 %v1634_v21, %v625_v48  ;;  %1903 = vmatprep.mubr.f32.mxu1 %v670_v44 }
 0x1c5   : > { %1904 = vmatmul.mubr.f32.gmra.mrb[6].mxu1 %v671_v46  ;;  %v673_v52 = vmax.f32 %v631_v47, 0.0 }
 0x1c6   : > { %v672_v50 = vmax.f32 %v626_v49, 0.0  ;;  %v1855_v51 = vpop.f32.mrb[10].mxu0  ;;  %2197 = vmatpush3.bf16.msra.mxu1 %v2194_v20  ;;  %v1298_v20 = vld [vmem:[#allocation11 + $0x10] sm:$0xff] }
 0x1c7   : > { %v641_v53 = vadd.f32 %v1855_v51, %v1634_v21  ;;  %v635_v54 = vpop.f32.mrb[11].mxu0 }
 0x1c8   : > { %v636_v55 = vadd.f32 %v1634_v21, %v635_v54  ;;  %1906 = vmatprep.mubr.f32.mxu1 %v672_v50 }
 0x1c9   : > { %1907 = vmatmul.mubr.f32.gmra.mrb[8].mxu1 %v673_v52  ;;  %v675_v58 = vmax.f32 %v641_v53, 0.0 }
 0x1ca   : > { %v674_v56 = vmax.f32 %v636_v55, 0.0  ;;  %v1858_v57 = vpop.f32.mrb[12].mxu0 }
 0x1cb   : > { %v651_v59 = vadd.f32 %v1858_v57, %v1634_v21  ;;  %v645_v60 = vpop.f32.mrb[13].mxu0 }
 0x1cc   : > { %v646_v61 = vadd.f32 %v1634_v21, %v645_v60  ;;  %1909 = vmatprep.mubr.f32.mxu1 %v674_v56 }
 0x1cd   : > { %1910 = vmatmul.mubr.f32.gmra.mrb[10].mxu1 %v675_v58  ;;  %v677_v0 = vmax.f32 %v651_v59, 0.0 }
 0x1ce   : > { %v676_v62 = vmax.f32 %v646_v61, 0.0  ;;  %v1861_v63 = vpop.f32.mrb[14].mxu0 }
 0x1cf   : > { %v661_v1 = vadd.f32 %v1861_v63, %v1634_v21  ;;  %v655_v2 = vpop.f32.mrb[15].mxu0 }
 0x1d0   : > { %v656_v3 = vadd.f32 %v1634_v21, %v655_v2  ;;  %1912 = vmatprep.mubr.f32.mxu1 %v676_v62  ;;  %v1088_v21 = vld [vmem:[#allocation10 + $0x40] sm:$0xff] }
 0x1d1   : > { %1913 = vmatmul.mubr.f32.gmra.mrb[12].mxu1 %v677_v0  ;;  %v679_v5 = vmax.f32 %v661_v1, 0.0  ;;  %v2198_v23 = vpack.c.bf16 %v1089_v22, %v1088_v21  ;;  %v2214_v21 = vpack.c.bf16 %v1297_v19, %v1296_v18  ;;  %v1299_v22 = vld [vmem:[#allocation11 + $0x18] sm:$0xff] }
 0x1d2   : > { %v678_v4 = vmax.f32 %v656_v3, 0.0 }
 0x1d3   : > { %2199 = vmatprep.subr.bf16.mxu1 %v2198_v23  ;;  %2215 = vmatprep.subr.bf16.mxu0 %v2214_v21 }
 0x1d4   : > { %1915 = vmatprep.mubr.f32.mxu1 %v678_v4  ;;  %2201 = vmatpush3.bf16.msra.mxu1 %v2198_v23  ;;  %v2978_v23 = vpack.c.bf16 %v1299_v22, %v1298_v20 }
 0x1d5   : > { %1916 = vmatmul.mubr.f32.gmra.mrb[14].mxu1 %v679_v5  ;;  %2203 = vmatprep.subr.bf16.mxu1 %v2202_v26 }
 0x1d8   : > { %2205 = vmatpush3.bf16.msra.mxu1 %v2202_v26  ;;  %v2981_v26 = vpack.c.bf16 %v1301_v25, %v1300_v24 }
 0x1d9   : > { %2207 = vmatprep.subr.bf16.mxu1 %v2206_v29 }
 0x1dc   : > { %2209 = vmatpush3.bf16.msra.mxu1 %v2206_v29  ;;  %v2985_v29 = vpack.c.bf16 %v1303_v28, %v1302_v27 }
 0x1dd   : > { %2211 = vmatprep.subr.bf16.mxu1 %v2210_v17 }
 0x1e0   : > { %2213 = vmatpush3.bf16.msra.mxu1 %v2210_v17 }
 0x1e1   : > { %2246 = vmatprep.subr.bf16.mxu1 %v2214_v21 }
 0x28c   : > { %v1896_v31 = vpop.f32.mrb[0].mxu1 }
 0x28d   : > { %v775_v32 = vadd.f32 %v1896_v31, %v1635_v30  ;;  %v769_v33 = vpop.f32.mrb[1].mxu1  ;;  %v1305_v31 = vld [vmem:[#allocation11 + $0x48] sm:$0xff] }
 0x28e   : > { %v770_v34 = vadd.f32 %v1635_v30, %v769_v33  ;;  %v1306_v33 = vld [vmem:[#allocation11 + $0x50] sm:$0xff] }
 0x28f   : > { %v849_v37 = vmax.f32 %v775_v32, 0.0 }
 0x290   : > { %v848_v35 = vmax.f32 %v770_v34, 0.0  ;;  %v1899_v36 = vpop.f32.mrb[2].mxu1  ;;  %v1307_v34 = vld [vmem:[#allocation11 + $0x58] sm:$0xff] }
 0x291   : > { %v785_v38 = vadd.f32 %v1899_v36, %v1635_v30  ;;  %v779_v39 = vpop.f32.mrb[3].mxu1  ;;  %v3001_v36 = vld [vmem:[%s3129_s6] ss:$0 sm:$0xff] }
 0x292   : > { %v780_v40 = vadd.f32 %v1635_v30, %v779_v39  ;;  %1950 = vmatprep.mubr.f32.mxu0 %v848_v35  ;;  %v2993_v35 = vpack.c.bf16 %v1307_v34, %v1306_v33 }
 0x293   : > { %1951 = vmatmul.mubr.f32.vlgmr.msra.gmra.mrb[16].mxu0 %v849_v37  ;;  %v851_v43 = vmax.f32 %v785_v38, 0.0 }
 0x294   : > { %v850_v41 = vmax.f32 %v780_v40, 0.0  ;;  %v1902_v42 = vpop.f32.mrb[4].mxu1  ;;  %2217 = vmatpush3.bf16.msra.mxu0 %v2214_v21 }
 0x295   : > { %v795_v44 = vadd.f32 %v1902_v42, %v1635_v30  ;;  %v789_v45 = vpop.f32.mrb[5].mxu1  ;;  %2219 = vmatprep.subr.bf16.mxu0 %v2978_v23 }
 0x296   : > { %v790_v46 = vadd.f32 %v1635_v30, %v789_v45  ;;  %1953 = vmatprep.mubr.f32.mxu0 %v850_v41 }
 0x297   : > { %1954 = vmatmul.mubr.f32.gmra.mrb[18].mxu0 %v851_v43  ;;  %v853_v49 = vmax.f32 %v795_v44, 0.0 }
 0x298   : > { %v852_v47 = vmax.f32 %v790_v46, 0.0  ;;  %v1905_v48 = vpop.f32.mrb[6].mxu1  ;;  %2221 = vmatpush3.bf16.msra.mxu0 %v2978_v23 }
 0x299   : > { %v805_v50 = vadd.f32 %v1905_v48, %v1635_v30  ;;  %v799_v51 = vpop.f32.mrb[7].mxu1  ;;  %2223 = vmatprep.subr.bf16.mxu0 %v2981_v26 }
 0x29a   : > { %v800_v52 = vadd.f32 %v1635_v30, %v799_v51  ;;  %1956 = vmatprep.mubr.f32.mxu0 %v852_v47 }
 0x29b   : > { %1957 = vmatmul.mubr.f32.gmra.mrb[20].mxu0 %v853_v49  ;;  %v855_v55 = vmax.f32 %v805_v50, 0.0 }
 0x29c   : > { %v854_v53 = vmax.f32 %v800_v52, 0.0  ;;  %v1908_v54 = vpop.f32.mrb[8].mxu1  ;;  %2225 = vmatpush3.bf16.msra.mxu0 %v2981_v26 }
 0x29d   : > { %v815_v56 = vadd.f32 %v1908_v54, %v1635_v30  ;;  %v809_v57 = vpop.f32.mrb[9].mxu1  ;;  %2227 = vmatprep.subr.bf16.mxu0 %v2985_v29 }
 0x29e   : > { %v810_v58 = vadd.f32 %v1635_v30, %v809_v57  ;;  %1959 = vmatprep.mubr.f32.mxu0 %v854_v53 }
 0x29f   : > { %1960 = vmatmul.mubr.f32.gmra.mrb[22].mxu0 %v855_v55  ;;  %v857_v61 = vmax.f32 %v815_v56, 0.0 }
 0x2a0   : > { %v856_v59 = vmax.f32 %v810_v58, 0.0  ;;  %v1911_v60 = vpop.f32.mrb[10].mxu1  ;;  %2229 = vmatpush3.bf16.msra.mxu0 %v2985_v29 }
 0x2a1   : > { %v825_v62 = vadd.f32 %v1911_v60, %v1635_v30  ;;  %v819_v63 = vpop.f32.mrb[11].mxu1 }
 0x2a2   : > { %v820_v0 = vadd.f32 %v1635_v30, %v819_v63  ;;  %1962 = vmatprep.mubr.f32.mxu0 %v856_v59 }
 0x2a3   : > { %1963 = vmatmul.mubr.f32.gmra.mrb[24].mxu0 %v857_v61  ;;  %v859_v3 = vmax.f32 %v825_v62, 0.0 }
 0x2a4   : > { %v858_v1 = vmax.f32 %v820_v0, 0.0  ;;  %v1914_v2 = vpop.f32.mrb[12].mxu1 }
 0x2a5   : > { %v835_v4 = vadd.f32 %v1914_v2, %v1635_v30  ;;  %v829_v5 = vpop.f32.mrb[13].mxu1 }
 0x2a6   : > { %v830_v6 = vadd.f32 %v1635_v30, %v829_v5  ;;  %1965 = vmatprep.mubr.f32.mxu0 %v858_v1 }
 0x2a7   : > { %1966 = vmatmul.mubr.f32.gmra.mrb[26].mxu0 %v859_v3  ;;  %v861_v9 = vmax.f32 %v835_v4, 0.0 }
 0x2a8   : > { %v860_v7 = vmax.f32 %v830_v6, 0.0  ;;  %v1917_v8 = vpop.f32.mrb[14].mxu1 }
 0x2a9   : > { %v845_v10 = vadd.f32 %v1917_v8, %v1635_v30  ;;  %v839_v11 = vpop.f32.mrb[15].mxu1 }
 0x2aa   : > { %v840_v12 = vadd.f32 %v1635_v30, %v839_v11  ;;  %1968 = vmatprep.mubr.f32.mxu0 %v860_v7  ;;  %v1304_v30 = vld [vmem:[#allocation11 + $0x40] sm:$0xff] }
 0x2ab   : > { %1969 = vmatmul.mubr.f32.gmra.mrb[28].mxu0 %v861_v9  ;;  %v863_v14 = vmax.f32 %v845_v10, 0.0  ;;  %v2989_v32 = vpack.c.bf16 %v1305_v31, %v1304_v30 }
 0x2ac   : > { %v862_v13 = vmax.f32 %v840_v12, 0.0 }
 0x2ad   : > { %2231 = vmatprep.subr.bf16.mxu0 %v2989_v32 }
 0x2ae   : > { %1971 = vmatprep.mubr.f32.mxu0 %v862_v13  ;;  %2233 = vmatpush3.bf16.msra.mxu0 %v2989_v32 }
 0x2af   : > { %1972 = vmatmul.mubr.f32.gmra.mrb[30].mxu0 %v863_v14  ;;  %2235 = vmatprep.subr.bf16.mxu0 %v2993_v35 }
 0x2b2   : > { %2237 = vmatpush3.bf16.msra.mxu0 %v2993_v35 }
 0x366   : > { %v1952_v37 = vpop.f32.mrb[16].mxu0 }
 0x367   : > { %v959_v38 = vadd.f32 %v1952_v37, %v3001_v36  ;;  %v953_v39 = vpop.f32.mrb[17].mxu0 }
 0x368   : > { %v954_v40 = vadd.f32 %v3001_v36, %v953_v39  ;;  %v1308_v39 = vld [vmem:[#allocation11 + $0x60] sm:$0xff] }
 0x369   : > { %v1049_v41 = vmul.f32 0.01, %v959_v38  ;;  %vm1033_vm0 = vcmp.ge.f32.partialorder %v959_v38, 0.0 }
 0x36a   : > { %v1048_v42 = vmul.f32 0.01, %v954_v40  ;;  %v1955_v43 = vpop.f32.mrb[18].mxu0  ;;  %vm1032_vm1 = vcmp.ge.f32.partialorder %v954_v40, 0.0 }
 0x36b   : > { %v969_v44 = vadd.f32 %v1955_v43, %v3001_v36  ;;  %v963_v45 = vpop.f32.mrb[19].mxu0  ;;  %v1065_v48 = vsel %vm1033_vm0, %v959_v38, %v1049_v41  ;;  %v3032_v43 = vld [vmem:[%s3161_s22] ss:$0 sm:$0xff]  ;;  %s2537_s22 = sshll.u32 %s2621_s28, 4  ;;  %s2538_s22 = int_to_ptr.vmem [resolvable:$false] %s2537_s22 }
 0x36c   : > { %v964_v46 = vadd.f32 %v3001_v36, %v963_v45  ;;  %v1064_v47 = vsel %vm1032_vm1, %v954_v40, %v1048_v42  ;;  %v1309_v40 = vld [vmem:[#allocation11 + $0x68] sm:$0xff]  ;;  %s2539_s30 = scalar_lea.vmem %s2538_s22, 4096  ;;  %p2540_p13 = scmp.lt.s32.totalorder %s3078_s12, %s2538_s22 }
 0x36d   : > { %v1051_v49 = vmul.f32 0.01, %v969_v44  ;;  %2006 = vmatprep.mubr.f32.mxu1 %v1064_v47  ;;  %vm1035_vm3 = vcmp.ge.f32.partialorder %v969_v44, 0.0  ;;  %v2238_v41 = vpack.c.bf16 %v1309_v40, %v1308_v39  ;;  %p2541_p0 = scmp.lt.s32.totalorder %s2539_s30, %s2533_s25 }
 0x36e   : > { %v1050_v50 = vmul.f32 0.01, %v964_v46  ;;  %v1958_v51 = vpop.f32.mrb[20].mxu0  ;;  %2007 = vmatmul.mubr.f32.vlgmr.msra.gmra.mrb[16].mxu1 %v1065_v48  ;;  %vm1034_vm2 = vcmp.ge.f32.partialorder %v964_v46, 0.0 }
 0x36f   : > { %v979_v52 = vadd.f32 %v1958_v51, %v3001_v36  ;;  %v973_v53 = vpop.f32.mrb[21].mxu0  ;;  %2254 = vmatpush3.bf16.msra.mxu1 %v2214_v21  ;;  %v1067_v57 = vsel %vm1035_vm3, %v969_v44, %v1051_v49  ;;  %2239 = vmatprep.subr.bf16.mxu0 %v2238_v41  ;;  %p2542_p2 = por %p2541_p0, %p2540_p13 }
 0x370   : > { %v974_v54 = vadd.f32 %v3001_v36, %v973_v53  ;;  %v1066_v55 = vsel %vm1034_vm2, %v964_v46, %v1050_v50  ;;  %2247 = vmatprep.subr.bf16.mxu1 %v2978_v23  ;;  %2241 = vmatpush3.bf16.msra.mxu0 %v2238_v41 }
 0x371   : > { %v1053_v56 = vmul.f32 0.01, %v979_v52  ;;  %2009 = vmatprep.mubr.f32.mxu1 %v1066_v55  ;;  %vm1037_vm5 = vcmp.ge.f32.partialorder %v979_v52, 0.0  ;;  %p2543_p7 = pnand %p2542_p2, %p2536_p1 }
 0x372   : > { %v1052_v58 = vmul.f32 0.01, %v974_v54  ;;  %v1961_v59 = vpop.f32.mrb[22].mxu0  ;;  %2010 = vmatmul.mubr.f32.gmra.mrb[18].mxu1 %v1067_v57  ;;  %vm1036_vm4 = vcmp.ge.f32.partialorder %v974_v54, 0.0 }
 0x373   : > { %v989_v60 = vadd.f32 %v1961_v59, %v3001_v36  ;;  %v983_v61 = vpop.f32.mrb[23].mxu0  ;;  %2255 = vmatpush3.bf16.msra.mxu1 %v2978_v23  ;;  %v1069_v1 = vsel %vm1037_vm5, %v979_v52, %v1053_v56 }
 0x374   : > { %v984_v62 = vadd.f32 %v3001_v36, %v983_v61  ;;  %v1068_v63 = vsel %vm1036_vm4, %v974_v54, %v1052_v58  ;;  %2248 = vmatprep.subr.bf16.mxu1 %v2981_v26 }
 0x375   : > { %v1055_v0 = vmul.f32 0.01, %v989_v60  ;;  %2012 = vmatprep.mubr.f32.mxu1 %v1068_v63  ;;  %vm1039_vm7 = vcmp.ge.f32.partialorder %v989_v60, 0.0 }
 0x376   : > { %v1054_v2 = vmul.f32 0.01, %v984_v62  ;;  %v1964_v3 = vpop.f32.mrb[24].mxu0  ;;  %2013 = vmatmul.mubr.f32.gmra.mrb[20].mxu1 %v1069_v1  ;;  %vm1038_vm6 = vcmp.ge.f32.partialorder %v984_v62, 0.0 }
 0x377   : > { %v999_v4 = vadd.f32 %v1964_v3, %v3001_v36  ;;  %v993_v5 = vpop.f32.mrb[25].mxu0  ;;  %2256 = vmatpush3.bf16.msra.mxu1 %v2981_v26  ;;  %v1071_v9 = vsel %vm1039_vm7, %v989_v60, %v1055_v0 }
 0x378   : > { %v994_v6 = vadd.f32 %v3001_v36, %v993_v5  ;;  %v1070_v7 = vsel %vm1038_vm6, %v984_v62, %v1054_v2  ;;  %2249 = vmatprep.subr.bf16.mxu1 %v2985_v29 }
 0x379   : > { %v1057_v8 = vmul.f32 0.01, %v999_v4  ;;  %2015 = vmatprep.mubr.f32.mxu1 %v1070_v7  ;;  %vm1041_vm9 = vcmp.ge.f32.partialorder %v999_v4, 0.0 }
 0x37a   : > { %v1056_v10 = vmul.f32 0.01, %v994_v6  ;;  %v1967_v11 = vpop.f32.mrb[26].mxu0  ;;  %2016 = vmatmul.mubr.f32.gmra.mrb[22].mxu1 %v1071_v9  ;;  %vm1040_vm8 = vcmp.ge.f32.partialorder %v994_v6, 0.0 }
 0x37b   : > { %v1009_v12 = vadd.f32 %v1967_v11, %v3001_v36  ;;  %v1003_v13 = vpop.f32.mrb[27].mxu0  ;;  %2257 = vmatpush3.bf16.msra.mxu1 %v2985_v29  ;;  %v1073_v17 = vsel %vm1041_vm9, %v999_v4, %v1057_v8 }
 0x37c   : > { %v1004_v14 = vadd.f32 %v3001_v36, %v1003_v13  ;;  %v1072_v15 = vsel %vm1040_vm8, %v994_v6, %v1056_v10  ;;  %2250 = vmatprep.subr.bf16.mxu1 %v2989_v32 }
 0x37d   : > { %v1059_v16 = vmul.f32 0.01, %v1009_v12  ;;  %2018 = vmatprep.mubr.f32.mxu1 %v1072_v15  ;;  %vm1043_vm11 = vcmp.ge.f32.partialorder %v1009_v12, 0.0 }
 0x37e   : > { %v1058_v18 = vmul.f32 0.01, %v1004_v14  ;;  %v1970_v19 = vpop.f32.mrb[28].mxu0  ;;  %2019 = vmatmul.mubr.f32.gmra.mrb[24].mxu1 %v1073_v17  ;;  %vm1042_vm10 = vcmp.ge.f32.partialorder %v1004_v14, 0.0 }
 0x37f   : > { %v1019_v20 = vadd.f32 %v1970_v19, %v3001_v36  ;;  %v1013_v21 = vpop.f32.mrb[29].mxu0  ;;  %2258 = vmatpush3.bf16.msra.mxu1 %v2989_v32  ;;  %v1075_v25 = vsel %vm1043_vm11, %v1009_v12, %v1059_v16 }
 0x380   : > { %v1014_v22 = vadd.f32 %v3001_v36, %v1013_v21  ;;  %v1074_v23 = vsel %vm1042_vm10, %v1004_v14, %v1058_v18  ;;  %2251 = vmatprep.subr.bf16.mxu1 %v2993_v35 }
 0x381   : > { %v1061_v24 = vmul.f32 0.01, %v1019_v20  ;;  %2021 = vmatprep.mubr.f32.mxu1 %v1074_v23  ;;  %vm1045_vm13 = vcmp.ge.f32.partialorder %v1019_v20, 0.0 }
 0x382   : > { %v1060_v26 = vmul.f32 0.01, %v1014_v22  ;;  %v1973_v27 = vpop.f32.mrb[30].mxu0  ;;  %2022 = vmatmul.mubr.f32.gmra.mrb[26].mxu1 %v1075_v25  ;;  %vm1044_vm12 = vcmp.ge.f32.partialorder %v1014_v22, 0.0 }
 0x383   : > { %v1029_v28 = vadd.f32 %v1973_v27, %v3001_v36  ;;  %v1023_v29 = vpop.f32.mrb[31].mxu0  ;;  %2259 = vmatpush3.bf16.msra.mxu1 %v2993_v35  ;;  %v1077_v33 = vsel %vm1045_vm13, %v1019_v20, %v1061_v24  ;;  %v1310_v35 = vld [vmem:[#allocation11 + $0x70] sm:$0xff] }
 0x384   : > { %v1024_v30 = vadd.f32 %v3001_v36, %v1023_v29  ;;  %v1076_v31 = vsel %vm1044_vm12, %v1014_v22, %v1060_v26  ;;  %2252 = vmatprep.subr.bf16.mxu1 %v2238_v41  ;;  %v1311_v36 = vld [vmem:[#allocation11 + $0x78] sm:$0xff] }
 0x385   : > { %v1063_v32 = vmul.f32 0.01, %v1029_v28  ;;  %2024 = vmatprep.mubr.f32.mxu1 %v1076_v31  ;;  %vm1047_vm15 = vcmp.ge.f32.partialorder %v1029_v28, 0.0  ;;  %v2242_v42 = vpack.c.bf16 %v1311_v36, %v1310_v35 }
 0x386   : > { %v1062_v34 = vmul.f32 0.01, %v1024_v30  ;;  %2025 = vmatmul.mubr.f32.gmra.mrb[28].mxu1 %v1077_v33  ;;  %vm1046_vm14 = vcmp.ge.f32.partialorder %v1024_v30, 0.0 }
 0x387   : > { %v1079_v38 = vsel %vm1047_vm15, %v1029_v28, %v1063_v32  ;;  %2260 = vmatpush3.bf16.msra.mxu1 %v2238_v41  ;;  %2243 = vmatprep.subr.bf16.mxu0 %v2242_v42 }
 0x388   : > { %v1078_v37 = vsel %vm1046_vm14, %v1024_v30, %v1062_v34  ;;  %2253 = vmatprep.subr.bf16.mxu1 %v2242_v42  ;;  %2245 = vmatpush3.bf16.msra.mxu0 %v2242_v42 }
 0x389   : > { %2027 = vmatprep.mubr.f32.mxu1 %v1078_v37 }
 0x38a   : > { %2028 = vmatmul.mubr.f32.gmra.mrb[30].mxu1 %v1079_v38 }
 0x38b   : > { %2261 = vmatpush3.bf16.msra.mxu1 %v2242_v42 }
 0x441   : > { %v2008_v44 = vpop.f32.mrb[16].mxu1 }
 0x442   : > { %v1175_v45 = vadd.f32 %v2008_v44, %v3032_v43  ;;  %v1169_v46 = vpop.f32.mrb[17].mxu1 }
 0x443   : > { %v1170_v47 = vadd.f32 %v3032_v43, %v1169_v46 }
 0x444   : > { %v1265_v48 = vmul.f32 0.01, %v1175_v45  ;;  %vm1249_vm0 = vcmp.ge.f32.partialorder %v1175_v45, 0.0 }
 0x445   : > { %v1264_v49 = vmul.f32 0.01, %v1170_v47  ;;  %v2011_v50 = vpop.f32.mrb[18].mxu1  ;;  %vm1248_vm1 = vcmp.ge.f32.partialorder %v1170_v47, 0.0 }
 0x446   : > { %v1185_v51 = vadd.f32 %v2011_v50, %v3032_v43  ;;  %v1179_v52 = vpop.f32.mrb[19].mxu1  ;;  %v1281_v55 = vsel %vm1249_vm0, %v1175_v45, %v1265_v48  ;;  %v1638_v45 = vld [vmem:[%s3162_s27] ss:$0 sm:$0xff] }
 0x447   : > { %v1180_v53 = vadd.f32 %v3032_v43, %v1179_v52  ;;  %v1280_v54 = vsel %vm1248_vm1, %v1170_v47, %v1264_v49 }
 0x448   : > { %v1267_v56 = vmul.f32 0.01, %v1185_v51  ;;  %2062 = vmatprep.mubr.f32.mxu0 %v1280_v54  ;;  %vm1251_vm3 = vcmp.ge.f32.partialorder %v1185_v51, 0.0 }
 0x449   : > { %v1266_v57 = vmul.f32 0.01, %v1180_v53  ;;  %v2014_v58 = vpop.f32.mrb[20].mxu1  ;;  %2063 = vmatmul.mubr.f32.vlgmr.msra.gmra.mrb[32].mxu0 %v1281_v55  ;;  %vm1250_vm2 = vcmp.ge.f32.partialorder %v1180_v53, 0.0 }
 0x44a   : > { %v1195_v59 = vadd.f32 %v2014_v58, %v3032_v43  ;;  %v1189_v60 = vpop.f32.mrb[21].mxu1  ;;  %v1283_v0 = vsel %vm1251_vm3, %v1185_v51, %v1267_v56 }
 0x44b   : > { %v1190_v61 = vadd.f32 %v3032_v43, %v1189_v60  ;;  %v1282_v62 = vsel %vm1250_vm2, %v1180_v53, %v1266_v57 }
 0x44c   : > { %v1269_v63 = vmul.f32 0.01, %v1195_v59  ;;  %2065 = vmatprep.mubr.f32.mxu0 %v1282_v62  ;;  %vm1253_vm5 = vcmp.ge.f32.partialorder %v1195_v59, 0.0 }
 0x44d   : > { %v1268_v1 = vmul.f32 0.01, %v1190_v61  ;;  %v2017_v2 = vpop.f32.mrb[22].mxu1  ;;  %2066 = vmatmul.mubr.f32.gmra.mrb[34].mxu0 %v1283_v0  ;;  %vm1252_vm4 = vcmp.ge.f32.partialorder %v1190_v61, 0.0 }
 0x44e   : > { %v1205_v3 = vadd.f32 %v2017_v2, %v3032_v43  ;;  %v1199_v4 = vpop.f32.mrb[23].mxu1  ;;  %v1285_v8 = vsel %vm1253_vm5, %v1195_v59, %v1269_v63 }
 0x44f   : > { %v1200_v5 = vadd.f32 %v3032_v43, %v1199_v4  ;;  %v1284_v6 = vsel %vm1252_vm4, %v1190_v61, %v1268_v1 }
 0x450   : > { %v1271_v7 = vmul.f32 0.01, %v1205_v3  ;;  %2068 = vmatprep.mubr.f32.mxu0 %v1284_v6  ;;  %vm1255_vm7 = vcmp.ge.f32.partialorder %v1205_v3, 0.0 }
 0x451   : > { %v1270_v9 = vmul.f32 0.01, %v1200_v5  ;;  %v2020_v10 = vpop.f32.mrb[24].mxu1  ;;  %2069 = vmatmul.mubr.f32.gmra.mrb[36].mxu0 %v1285_v8  ;;  %vm1254_vm6 = vcmp.ge.f32.partialorder %v1200_v5, 0.0 }
 0x452   : > { %v1215_v11 = vadd.f32 %v2020_v10, %v3032_v43  ;;  %v1209_v12 = vpop.f32.mrb[25].mxu1  ;;  %v1287_v16 = vsel %vm1255_vm7, %v1205_v3, %v1271_v7 }
 0x453   : > { %v1210_v13 = vadd.f32 %v3032_v43, %v1209_v12  ;;  %v1286_v14 = vsel %vm1254_vm6, %v1200_v5, %v1270_v9 }
 0x454   : > { %v1273_v15 = vmul.f32 0.01, %v1215_v11  ;;  %2071 = vmatprep.mubr.f32.mxu0 %v1286_v14  ;;  %vm1257_vm8 = vcmp.ge.f32.partialorder %v1215_v11, 0.0 }
 0x455   : > { %v1272_v17 = vmul.f32 0.01, %v1210_v13  ;;  %v2023_v18 = vpop.f32.mrb[26].mxu1  ;;  %2072 = vmatmul.mubr.f32.gmra.mrb[38].mxu0 %v1287_v16  ;;  %vm1256_vm9 = vcmp.ge.f32.partialorder %v1210_v13, 0.0 }
 0x456   : > { %v1225_v19 = vadd.f32 %v2023_v18, %v3032_v43  ;;  %v1219_v20 = vpop.f32.mrb[27].mxu1  ;;  %v1289_v23 = vsel %vm1257_vm8, %v1215_v11, %v1273_v15 }
 0x457   : > { %v1220_v21 = vadd.f32 %v3032_v43, %v1219_v20  ;;  %v1288_v22 = vsel %vm1256_vm9, %v1210_v13, %v1272_v17 }
 0x458   : > { %v1275_v24 = vmul.f32 0.01, %v1225_v19  ;;  %2074 = vmatprep.mubr.f32.mxu1 %v1288_v22  ;;  %vm1259_vm11 = vcmp.ge.f32.partialorder %v1225_v19, 0.0 }
 0x459   : > { %v1274_v25 = vmul.f32 0.01, %v1220_v21  ;;  %v2026_v26 = vpop.f32.mrb[28].mxu1  ;;  %2075 = vmatmul.mubr.f32.vlgmr.msra.gmra.mrb[32].mxu1 %v1289_v23  ;;  %vm1258_vm10 = vcmp.ge.f32.partialorder %v1220_v21, 0.0 }
 0x45a   : > { %v1235_v27 = vadd.f32 %v2026_v26, %v3032_v43  ;;  %v1229_v28 = vpop.f32.mrb[29].mxu1  ;;  %v1291_v32 = vsel %vm1259_vm11, %v1225_v19, %v1275_v24 }
 0x45b   : > { %v1230_v29 = vadd.f32 %v3032_v43, %v1229_v28  ;;  %v1290_v30 = vsel %vm1258_vm10, %v1220_v21, %v1274_v25 }
 0x45c   : > { %v1277_v31 = vmul.f32 0.01, %v1235_v27  ;;  %2077 = vmatprep.mubr.f32.mxu1 %v1290_v30  ;;  %vm1261_vm13 = vcmp.ge.f32.partialorder %v1235_v27, 0.0 }
 0x45d   : > { %v1276_v33 = vmul.f32 0.01, %v1230_v29  ;;  %v2029_v34 = vpop.f32.mrb[30].mxu1  ;;  %2078 = vmatmul.mubr.f32.gmra.mrb[34].mxu1 %v1291_v32  ;;  %vm1260_vm12 = vcmp.ge.f32.partialorder %v1230_v29, 0.0 }
 0x45e   : > { %v1245_v37 = vadd.f32 %v2029_v34, %v3032_v43  ;;  %v1239_v38 = vpop.f32.mrb[31].mxu1  ;;  %v1293_v35 = vsel %vm1261_vm13, %v1235_v27, %v1277_v31 }
 0x45f   : > { %v1240_v39 = vadd.f32 %v3032_v43, %v1239_v38  ;;  %v1292_v40 = vsel %vm1260_vm12, %v1230_v29, %v1276_v33 }
 0x460   : > { %v1279_v41 = vmul.f32 0.01, %v1245_v37  ;;  %2080 = vmatprep.mubr.f32.mxu1 %v1292_v40  ;;  %vm1263_vm15 = vcmp.ge.f32.partialorder %v1245_v37, 0.0 }
 0x461   : > { %v1278_v36 = vmul.f32 0.01, %v1240_v39  ;;  %2081 = vmatmul.mubr.f32.gmra.mrb[36].mxu1 %v1293_v35  ;;  %vm1262_vm14 = vcmp.ge.f32.partialorder %v1240_v39, 0.0 }
 0x462   : > { %v1295_v44 = vsel %vm1263_vm15, %v1245_v37, %v1279_v41 }
 0x463   : > { %v1294_v42 = vsel %vm1262_vm14, %v1240_v39, %v1278_v36 }
 0x464   : > { %2083 = vmatprep.mubr.f32.mxu1 %v1294_v42 }
 0x465   : > { %2084 = vmatmul.mubr.f32.gmra.mrb[38].mxu1 %v1295_v44 }
 0x51c   : > { %v2064_v46 = vpop.f32.mrb[32].mxu0 }
 0x51d   : > { %v1391_v47 = vadd.f32 %v2064_v46, %v1638_v45  ;;  %v1385_v43 = vpop.f32.mrb[33].mxu0 }
 0x51e   : > { %v1386_v48 = vadd.f32 %v1638_v45, %v1385_v43 }
 0x51f   : > { %1465 = vst [vmem:[%s3055_s24 + $0x8] sm:$0xff] %v1391_v47 }
 0x520   : > { %1464 = vst [vmem:[%s3055_s24] sm:$0xff] %v1386_v48  ;;  %v2067_v49 = vpop.f32.mrb[34].mxu0 }
 0x521   : > { %v1401_v50 = vadd.f32 %v2067_v49, %v1638_v45  ;;  %v1395_v51 = vpop.f32.mrb[35].mxu0 }
 0x522   : > { %v1396_v52 = vadd.f32 %v1638_v45, %v1395_v51 }
 0x523   : > { %1467 = vst [vmem:[%s3055_s24 + $0x18] sm:$0xff] %v1401_v50 }
 0x524   : > { %1466 = vst [vmem:[%s3055_s24 + $0x10] sm:$0xff] %v1396_v52  ;;  %v2070_v53 = vpop.f32.mrb[36].mxu0 }
 0x525   : > { %v1411_v54 = vadd.f32 %v2070_v53, %v1638_v45  ;;  %v1405_v55 = vpop.f32.mrb[37].mxu0 }
 0x526   : > { %v1406_v56 = vadd.f32 %v1638_v45, %v1405_v55 }
 0x527   : > { %1469 = vst [vmem:[%s3055_s24 + $0x28] sm:$0xff] %v1411_v54 }
 0x528   : > { %1468 = vst [vmem:[%s3055_s24 + $0x20] sm:$0xff] %v1406_v56  ;;  %v2073_v57 = vpop.f32.mrb[38].mxu0 }
 0x529   : > { %v1421_v58 = vadd.f32 %v2073_v57, %v1638_v45  ;;  %v1415_v59 = vpop.f32.mrb[39].mxu0 }
 0x52a   : > { %v1416_v60 = vadd.f32 %v1638_v45, %v1415_v59 }
 0x52b   : > { %1471 = vst [vmem:[%s3055_s24 + $0x38] sm:$0xff] %v1421_v58 }
 0x52c   : > { %1470 = vst [vmem:[%s3055_s24 + $0x30] sm:$0xff] %v1416_v60  ;;  %v2076_v61 = vpop.f32.mrb[32].mxu1 }
 0x52d   : > { %v1431_v62 = vadd.f32 %v2076_v61, %v1638_v45  ;;  %v1425_v63 = vpop.f32.mrb[33].mxu1 }
 0x52e   : > { %v1426_v0 = vadd.f32 %v1638_v45, %v1425_v63 }
 0x52f   : > { %1473 = vst [vmem:[%s3055_s24 + $0x48] sm:$0xff] %v1431_v62 }
 0x530   : > { %1472 = vst [vmem:[%s3055_s24 + $0x40] sm:$0xff] %v1426_v0  ;;  %v2079_v1 = vpop.f32.mrb[34].mxu1 }
 0x531   : > { %v1441_v2 = vadd.f32 %v2079_v1, %v1638_v45  ;;  %v1435_v3 = vpop.f32.mrb[35].mxu1 }
 0x532   : > { %v1436_v4 = vadd.f32 %v1638_v45, %v1435_v3 }
 0x533   : > { %1475 = vst [vmem:[%s3055_s24 + $0x58] sm:$0xff] %v1441_v2 }
 0x534   : > { %1474 = vst [vmem:[%s3055_s24 + $0x50] sm:$0xff] %v1436_v4  ;;  %v2082_v5 = vpop.f32.mrb[36].mxu1 }
 0x535   : > { %v1451_v6 = vadd.f32 %v2082_v5, %v1638_v45  ;;  %v1445_v7 = vpop.f32.mrb[37].mxu1 }
 0x536   : > { %v1446_v8 = vadd.f32 %v1638_v45, %v1445_v7 }
 0x537   : > { %1477 = vst [vmem:[%s3055_s24 + $0x68] sm:$0xff] %v1451_v6 }
 0x538   : > { %1476 = vst [vmem:[%s3055_s24 + $0x60] sm:$0xff] %v1446_v8  ;;  %v2085_v9 = vpop.f32.mrb[38].mxu1 }
 0x539   : > { %v1461_v10 = vadd.f32 %v2085_v9, %v1638_v45  ;;  %v1455_v11 = vpop.f32.mrb[39].mxu1 }
 0x53a   : > { %v1456_v12 = vadd.f32 %v1638_v45, %v1455_v11 }
 0x53b   : > { %1479 = vst [vmem:[%s3055_s24 + $0x78] sm:$0xff] %v1461_v10 }
 0x53c   : > { %1478 = vst [vmem:[%s3055_s24 + $0x70] sm:$0xff] %v1456_v12 }
 0x53d   : > { %2546 = shalt.err (!%p2543_p7)
}
 0x53e   : > { %s2547_s15 = scalar_lea.hbm %s3076_s8, 2048  ;;  %s2551_s29 = scalar_lea.hbm %s3163_s1, 8192 }
 0x53f   : > { %p2548_p5 = scmp.ne.s32.totalorder %s3076_s8, %s2547_s15  ;;  %p2552_p3 = scmp.lt.u32.totalorder %s3076_s8, %s3163_s1 }
 0x540   : > { %p2553_p4 = scmp.lt.u32.totalorder %s2551_s29, %s2547_s15  ;;  %p2555_p6 = scmp.lt.u32.totalorder %s2547_s15, %s3076_s8 }
 0x541   : > { %p2549_p10 = pnand %p2548_p5, %p3164_p9 }
 0x542   : > { %p2554_p8 = por %p2553_p4, %p2552_p3 }
 0x543   : > { %p2550_p11 = pneg %p2549_p10 }
 0x544   : > { %p2556_p12 = por %p2555_p6, %p2554_p8 }
 0x546   : > { %p2557_p1 = pnand %p2556_p12, %p2550_p11 }
 0x548   : > { %2560 = shalt.err (!%p2557_p1)
}
 0x549   : > { %s2622_s25 = smov 128   ;;  %s2623_s28 = smov 8  }
 0x54a   : > { %2284 = dma.vmem_to_hbm [thread:$0]  (%p3164_p9), %s3078_s12, 2048, %s3076_s8, %s1481_s23, %s2622_s25, %s2622_s25, %s2623_s28  }
 0x54b PF: > { %p2321_p13 = scmp.ge.s32.totalorder %s2611_s20, 2  ;;  %s1509_s22 = sand.u32 1, %s2599_s17  }
 0x54c   : > { %p3165_p0 = scmp.ne.s32.totalorder %s3151_s21, 0  ;;  %s1510_s30 = scalar_lea.sflag [#allocation4], %s1509_s22 }
 0x54e   : > { %p2307_p2 = pnand %p2321_p13, %p3165_p0 }
 0x550   : > { %2594 = dma.done.wait (!%p2307_p2), %s1510_s30, 2048  }
 0x551   : > { %2596 = vsyncadd (!%p2307_p2), %s1510_s30, 4294965248  ;;  %p27_p7 = scmp.ge.s32.totalorder %s2856_s16, 6   ;;  %s3166_s17 = smov %s2603_s18 }
 0x552   : > { %s3167_s18 = smov %s2607_s19  ;;  %s3168_s19 = smov %s2868_s10 }
 0x553   : > { %s3169_s20 = smov %s2856_s16  ;;  %29 = sbr.rel (!%p27_p7) target bundleno = 13 (0xd), region = 129 }
 0x55a   :  { %1515 = vsyncpa [#allocation3], 1 }
 0x55b   :  { %1517 = vsyncpa [#allocation3 + $0x1], 1 }
 0x55c   :  { %1518 = vsyncpa [#allocation6], 1 }
 0x55d   :  { %1519 = vsyncpa [#allocation9], 1 }
 0x55e   :  { %1520 = vsyncpa [#allocation12], 1 }
 0x55f   :  { %1521 = vsyncpa [#allocation4], 1 }
 0x560   :  { %1523 = vsyncpa [#allocation4 + $0x1], 1 }

</bundles_post_ra>
